<compile_context>
chip_gen: v7x
topology: tpu7x:2x2x1
jax: 0.10.0
libtpu: 0.0.40
codegen_flags: <defaults>
</compile_context>

<pallas_src>
import functools

import numpy as np

import jax
import jax.numpy as jnp
from jax.experimental import pallas as pl
from jax.experimental.pallas import tpu as pltpu  # noqa: F401  (kept per kernel-template convention)

# ---- small CLIP-vision-like config ----
B = 2                               # batch
C = 3                               # image channels
IMG = 16                            # image size
PATCH = 8                           # patch size
NUM_PATCHES = (IMG // PATCH) ** 2   # 4
SEQ = NUM_PATCHES + 1               # 5 = CLS + patches
CPP = C * PATCH * PATCH             # flattened patch size = 192
CPP_PAD = 256                       # lane-padded patch size (two full 128-lane groups)
D = 32                              # vision hidden size
HEADS = 4
HEAD_DIM = D // HEADS               # 8
FFN = 64                            # MLP intermediate size
LAYERS = 2
PROJ = 16                           # projection_dim
LN_EPS = 1e-5
LANES = 128                         # lane width / padded output width
NEG = -1e30                         # additive mask value (finite, no inf-inf NaNs)

assert CPP + SEQ <= CPP_PAD         # positional one-hot columns fit in the padding


def _pad8(n):
    return -(-n // 8) * 8


# ----------------------- packed parameter-slab layout (static) -----------------------
def _build_layout():
    off = {}
    r = 0

    def add(name, rows):
        nonlocal r
        off[name] = r
        r += _pad8(rows)

    add('patch_w', CPP_PAD)          # (CPP_PAD, D): conv-as-matmul + pos/CLS rows
    add('pre_ln', 2)                 # (2, D) [gamma; beta]
    add('post_ln', 2)
    add('proj_w', D)                 # (D, LANES): visual_projection, lane-padded
    add('head_mask', HEADS)          # (HEADS, D) 0/1 per-head column masks
    for l in range(LAYERS):
        add(f'ln1_{l}', 2)
        add(f'qkv_w_{l}', D)         # (D, 3D) fused Q/K/V (Q pre-scaled)
        add(f'qkv_b_{l}', 1)
        add(f'o_w_{l}', D)
        add(f'o_b_{l}', 1)
        add(f'ln2_{l}', 2)
        add(f'fc1_w_{l}', D)
        add(f'fc1_b_{l}', 1)
        add(f'fc2_w_{l}', FFN)
        add(f'fc2_b_{l}', 1)
    return off, r


_OFF, PARAM_ROWS = _build_layout()


# ----------------------- fused Pallas kernel -----------------------
def _layernorm(x, gb):
    """x: (M, D); gb: (2, D) stacked [gamma, beta]."""
    g = gb[0:1, :]
    b = gb[1:2, :]
    mu = jnp.mean(x, axis=-1, keepdims=True)
    var = jnp.mean(jnp.square(x - mu), axis=-1, keepdims=True)
    return (x - mu) * jax.lax.rsqrt(var + LN_EPS) * g + b


def _clip_fused_kernel(tok_ref,   # (M_PAD, CPP_PAD) stacked tokens (all images) + pos one-hot cols
                       aux_ref,   # (M_PAD + pad8(B), 128): block-diag mask rows, then pooling matrix
                       par_ref,   # (PARAM_ROWS, 128): packed parameter slab
                       out_ref,   # (pad8(B), 128): lane-dense output slab
                       *, layer):
    f32 = jnp.float32
    m_pad = tok_ref.shape[0]
    out_rows = out_ref.shape[0]

    def P(name, rows, cols):
        off = _OFF[name]
        return par_ref[off:off + rows, 0:cols]

    # --- embeddings: patch "conv", CLS token and positional table are all folded
    #     into this single matmul (one-hot position columns in tok, pos rows in the
    #     weight block with class_emb added to row 0), then pre-LN.
    x = jnp.dot(tok_ref[...], P('patch_w', CPP_PAD, D), preferred_element_type=f32)
    x = _layernorm(x, P('pre_ln', 2, D))

    attn_mask = aux_ref[0:m_pad, 0:m_pad]            # (m, m) block-diagonal 0 / NEG
    head_mask = P('head_mask', HEADS, D)             # (HEADS, D) 0/1 lane masks

    if layer == 'post-projection':
        n_layers = LAYERS
    else:
        n_layers = layer if layer >= 0 else LAYERS + 1 + layer   # hidden_states index

    for l in range(n_layers):
        # --- self-attention (pre-LN), fused QKV, head-masked full-width matmuls ---
        h = _layernorm(x, P(f'ln1_{l}', 2, D))
        qkv = (jnp.dot(h, P(f'qkv_w_{l}', D, 3 * D), preferred_element_type=f32)
               + P(f'qkv_b_{l}', 1, 3 * D))
        q = qkv[:, 0:D]              # already scaled by 1/sqrt(head_dim) at pack time
        k = qkv[:, D:2 * D]
        v = qkv[:, 2 * D:3 * D]
        attn_in = None
        for hd in range(HEADS):
            cm = head_mask[hd:hd + 1, :]                               # (1, D)
            # (q*cm) @ k^T only contracts over head-hd's dims.
            s = jax.lax.dot_general(q * cm, k, (((1,), (1,)), ((), ())),
                                    preferred_element_type=f32)        # (m, m)
            s = s + attn_mask
            s = s - jnp.max(s, axis=-1, keepdims=True)
            p = jnp.exp(s)
            p = p * pl.reciprocal(jnp.sum(p, axis=-1, keepdims=True), approx=True)
            # p @ v, then keep only head-hd's output columns (correct per-head mixing).
            y = jnp.dot(p, v, preferred_element_type=f32) * cm          # (m, D)
            attn_in = y if attn_in is None else attn_in + y
        attn = (jnp.dot(attn_in, P(f'o_w_{l}', D, D), preferred_element_type=f32)
                + P(f'o_b_{l}', 1, D))
        x = x + attn

        # --- MLP (pre-LN, quick_gelu) ---
        h = _layernorm(x, P(f'ln2_{l}', 2, D))
        h = (jnp.dot(h, P(f'fc1_w_{l}', D, FFN), preferred_element_type=f32)
             + P(f'fc1_b_{l}', 1, FFN))
        h = h * jax.nn.sigmoid(1.702 * h)                                # quick_gelu
        h = (jnp.dot(h, P(f'fc2_w_{l}', FFN, D), preferred_element_type=f32)
             + P(f'fc2_b_{l}', 1, D))
        x = x + h

    # Pooling (CLS select or patch mean) as one tiny matmul with a pooling matrix.
    pool = aux_ref[m_pad:m_pad + out_rows, 0:m_pad]                      # (out_rows, m)
    pooled = jnp.dot(pool, x, preferred_element_type=f32)                # (out_rows, D)

    if layer == 'post-projection':
        pooled = _layernorm(pooled, P('post_ln', 2, D))
        out_ref[...] = jnp.dot(pooled, P('proj_w', D, LANES),
                               preferred_element_type=f32)               # lane-dense
    else:
        out_ref[...] = jnp.concatenate(
            [pooled, jnp.zeros((out_rows, LANES - D), f32)], axis=1)


# ----------------------- parameters -----------------------
def init_params(key):
    def nrm(k, shape, scale=0.02):
        return scale * jax.random.normal(k, shape, dtype=jnp.float32)

    keys = jax.random.split(key, 12)
    ln_stack = jnp.concatenate([jnp.ones((LAYERS, 1, D), jnp.float32),
                                jnp.zeros((LAYERS, 1, D), jnp.float32)], axis=1)
    ln_single = jnp.stack([jnp.ones((D,), jnp.float32), jnp.zeros((D,), jnp.float32)])
    return {
        # conv2d(patch, stride=patch, bias=False) expressed as a (C*P*P, D) matmul
        'patch_w': nrm(keys[0], (CPP, D)),
        'class_emb': nrm(keys[1], (D,)),
        'pos_emb': nrm(keys[2], (SEQ, D)),
        'pre_ln': ln_single,
        'post_ln': ln_single,
        'proj_w': nrm(keys[3], (D, PROJ)),            # visual_projection (no bias)
        'ln1': ln_stack,
        'ln2': ln_stack,
        'qkv_w': nrm(keys[4], (LAYERS, D, 3 * D)),    # fused Q/K/V
        'qkv_b': nrm(keys[5], (LAYERS, 1, 3 * D)),
        'o_w': nrm(keys[6], (LAYERS, D, D)),
        'o_b': nrm(keys[7], (LAYERS, 1, D)),
        'fc1_w': nrm(keys[8], (LAYERS, D, FFN)),
        'fc1_b': nrm(keys[9], (LAYERS, 1, FFN)),
        'fc2_w': nrm(keys[10], (LAYERS, FFN, D)),
        'fc2_b': nrm(keys[11], (LAYERS, 1, D)),
    }


def pack_params(params):
    """Pack all weights into one (PARAM_ROWS, 128) f32 slab (single DMA)."""
    slab = np.zeros((PARAM_ROWS, LANES), np.float32)

    def put(name, arr):
        a = np.array(arr, dtype=np.float32)
        r, c = a.shape
        off = _OFF[name]
        slab[off:off + r, 0:c] = a

    # patch embedding with positional/CLS rows folded in (rows CPP..CPP+SEQ).
    pw = np.zeros((CPP_PAD, D), np.float32)
    pw[:CPP, :] = np.array(params['patch_w'], dtype=np.float32)
    pos_cls = np.array(params['pos_emb'], dtype=np.float32)
    pos_cls[0, :] += np.array(params['class_emb'], dtype=np.float32)
    pw[CPP:CPP + SEQ, :] = pos_cls
    put('patch_w', pw)

    put('pre_ln', params['pre_ln'])
    put('post_ln', params['post_ln'])

    prj = np.zeros((D, LANES), np.float32)            # lane-padded projection
    prj[:, :PROJ] = np.array(params['proj_w'], dtype=np.float32)
    put('proj_w', prj)

    hm = np.zeros((HEADS, D), np.float32)             # per-head 0/1 column masks
    for hd in range(HEADS):
        hm[hd, hd * HEAD_DIM:(hd + 1) * HEAD_DIM] = 1.0
    put('head_mask', hm)

    scale = HEAD_DIM ** -0.5
    for l in range(LAYERS):
        put(f'ln1_{l}', params['ln1'][l])
        qw = np.array(params['qkv_w'][l], dtype=np.float32)
        qb = np.array(params['qkv_b'][l], dtype=np.float32)
        qw[:, :D] *= scale                            # fold 1/sqrt(head_dim) into Q
        qb[:, :D] *= scale
        put(f'qkv_w_{l}', qw)
        put(f'qkv_b_{l}', qb)
        put(f'o_w_{l}', params['o_w'][l])
        put(f'o_b_{l}', params['o_b'][l])
        put(f'ln2_{l}', params['ln2'][l])
        put(f'fc1_w_{l}', params['fc1_w'][l])
        put(f'fc1_b_{l}', params['fc1_b'][l])
        put(f'fc2_w_{l}', params['fc2_w'][l])
        put(f'fc2_b_{l}', params['fc2_b'][l])
    return jnp.asarray(slab)


# ----------------------- model forward -----------------------
def _clip_forward(param_slab, pixel_values, tokens='CLS', layer='post-projection'):
    """Mirrors CLIP.forward == get_image_features_{post,pre}_projection."""
    assert tokens in ('CLS', 'patches')
    assert (layer != 'post-projection') or (tokens == 'CLS')   # implies()
    b = pixel_values.shape[0]
    m = b * SEQ
    m_pad = _pad8(m)
    b_pad = _pad8(b)
    p = PATCH

    # NCHW -> non-overlapping patches flattened to (B, NUM_PATCHES, C*P*P).
    patches = pixel_values.reshape(b, C, IMG // p, p, IMG // p, p)
    patches = patches.transpose(0, 2, 4, 1, 3, 5).reshape(b, NUM_PATCHES, CPP)
    # Row i*SEQ is the CLS slot (zero pixels); positional / class embeddings are
    # selected by one-hot columns in the padding region (cols CPP..CPP+SEQ).
    tok = jnp.concatenate([jnp.zeros((b, 1, CPP), jnp.float32), patches],
                          axis=1).reshape(m, CPP)
    pos_oh = np.zeros((m, CPP_PAD - CPP), np.float32)
    pos_oh[np.arange(m), np.arange(m) % SEQ] = 1.0
    tok = jnp.concatenate([tok, jnp.asarray(pos_oh)], axis=1)
    tok = jnp.pad(tok, ((0, m_pad - m), (0, 0)))                 # (m_pad, CPP_PAD)

    # Aux slab (trace-time constants): block-diagonal attention mask + pooling matrix.
    aux = np.zeros((m_pad + b_pad, LANES), np.float32)
    idx = np.arange(m_pad)
    img = idx // SEQ
    valid = (img[:, None] == img[None, :]) & (idx[:, None] < m) & (idx[None, :] < m)
    aux[0:m_pad, 0:m_pad] = np.where(valid, 0.0, NEG).astype(np.float32)
    pool = np.zeros((b_pad, m_pad), np.float32)
    if tokens == 'CLS':
        pool[np.arange(b), np.arange(b) * SEQ] = 1.0              # pick CLS row
    else:
        for i in range(b):
            pool[i, i * SEQ + 1: i * SEQ + SEQ] = 1.0 / NUM_PATCHES   # mean over patches
    aux[m_pad:m_pad + b_pad, 0:m_pad] = pool
    aux = jnp.asarray(aux)

    out_n = PROJ if layer == 'post-projection' else D

    # Single grid-less pallas_call: every operand is fully VMEM-resident,
    # all intermediates stay in vregs/VMEM, one lane-dense (b_pad, 128) store.
    out = pl.pallas_call(
        functools.partial(_clip_fused_kernel, layer=layer),
        out_shape=jax.ShapeDtypeStruct((b_pad, LANES), jnp.float32),
    )(tok, aux, param_slab)

    return out[:b, :out_n]


clip_forward = jax.jit(_clip_forward, static_argnames=("tokens", "layer"))


if __name__ == "__main__":
    key = jax.random.PRNGKey(0)
    pkey, xkey = jax.random.split(key)
    params = init_params(pkey)
    slab = pack_params(params)
    x = jax.random.normal(xkey, (B, C, IMG, IMG), dtype=jnp.float32)

    feats_post = clip_forward(slab, x, tokens='CLS', layer='post-projection')
    feats_pre = clip_forward(slab, x, tokens='patches', layer=-1)
    jax.block_until_ready(feats_post)
    jax.block_until_ready(feats_pre)

    assert feats_post.shape == (B, PROJ) and feats_post.dtype == jnp.float32
    assert feats_pre.shape == (B, D) and feats_pre.dtype == jnp.float32
    assert bool(jnp.all(jnp.isfinite(feats_post)))
    assert bool(jnp.all(jnp.isfinite(feats_pre)))
    print("KERNEL_OK")
</pallas_src>

<mosaic_0001>
module attributes {stable_mosaic.version = 11 : i64} {
  func.func @_clip_fused_kernel(%arg0: memref<16x256xf32, #tpu.memory_space<vmem>>, %arg1: memref<24x128xf32, #tpu.memory_space<vmem>>, %arg2: memref<728x128xf32, #tpu.memory_space<vmem>>, %arg3: memref<8x128xf32, #tpu.memory_space<vmem>>) attributes {dimension_semantics = [], scalar_prefetch = 0 : i64, scratch_operands = 0 : i64, tpu.core_type = #tpu.core_type<tc>} {
    %c0 = arith.constant 0 : index
    %c0_0 = arith.constant 0 : index
    %0 = vector.load %arg0[%c0, %c0_0] : memref<16x256xf32, #tpu.memory_space<vmem>>, vector<16x256xf32>
    %c0_1 = arith.constant 0 : index
    %c0_2 = arith.constant 0 : index
    %1 = vector.load %arg2[%c0_1, %c0_2] : memref<728x128xf32, #tpu.memory_space<vmem>>, vector<256x32xf32>
    %cst = arith.constant dense<0.000000e+00> : vector<16x32xf32>
    %2 = tpu.matmul %0, %1, %cst {dimension_numbers = #tpu.dot_dimension_numbers<[1], [0], [0], [1], [0, 0, 1, 1], [], []>} : vector<16x256xf32>, vector<256x32xf32>, vector<16x32xf32> -> vector<16x32xf32>
    %c256 = arith.constant 256 : index
    %c0_3 = arith.constant 0 : index
    %3 = vector.load %arg2[%c256, %c0_3] : memref<728x128xf32, #tpu.memory_space<vmem>>, vector<2x32xf32>
    %4 = vector.extract_strided_slice %3 {offsets = [0, 0], sizes = [1, 32], strides = [1, 1]} : vector<2x32xf32> to vector<1x32xf32>
    %5 = vector.extract_strided_slice %3 {offsets = [1, 0], sizes = [1, 32], strides = [1, 1]} : vector<2x32xf32> to vector<1x32xf32>
    %cst_4 = arith.constant dense<0.000000e+00> : vector<16xf32>
    %6 = vector.multi_reduction <add>, %2, %cst_4 [1] : vector<16x32xf32> to vector<16xf32>
    %7 = vector.shape_cast %6 : vector<16xf32> to vector<16x1xf32>
    %cst_5 = arith.constant 3.200000e+01 : f32
    %8 = vector.broadcast %cst_5 : f32 to vector<16x1xf32>
    %9 = arith.divf %7, %8 : vector<16x1xf32>
    %10 = vector.broadcast %9 : vector<16x1xf32> to vector<16x32xf32>
    %11 = arith.subf %2, %10 : vector<16x32xf32>
    %12 = arith.mulf %11, %11 : vector<16x32xf32>
    %cst_6 = arith.constant dense<0.000000e+00> : vector<16xf32>
    %13 = vector.multi_reduction <add>, %12, %cst_6 [1] : vector<16x32xf32> to vector<16xf32>
    %14 = vector.shape_cast %13 : vector<16xf32> to vector<16x1xf32>
    %cst_7 = arith.constant 3.200000e+01 : f32
    %15 = vector.broadcast %cst_7 : f32 to vector<16x1xf32>
    %16 = arith.divf %14, %15 : vector<16x1xf32>
    %17 = vector.broadcast %9 : vector<16x1xf32> to vector<16x32xf32>
    %18 = arith.subf %2, %17 : vector<16x32xf32>
    %cst_8 = arith.constant 9.99999974E-6 : f32
    %19 = vector.broadcast %cst_8 : f32 to vector<16x1xf32>
    %20 = arith.addf %16, %19 : vector<16x1xf32>
    %21 = math.rsqrt %20 : vector<16x1xf32>
    %22 = vector.broadcast %21 : vector<16x1xf32> to vector<16x32xf32>
    %23 = arith.mulf %18, %22 : vector<16x32xf32>
    %24 = vector.broadcast %4 : vector<1x32xf32> to vector<16x32xf32>
    %25 = arith.mulf %23, %24 : vector<16x32xf32>
    %26 = vector.broadcast %5 : vector<1x32xf32> to vector<16x32xf32>
    %27 = arith.addf %25, %26 : vector<16x32xf32>
    %c0_9 = arith.constant 0 : index
    %c0_10 = arith.constant 0 : index
    %28 = vector.load %arg1[%c0_9, %c0_10] : memref<24x128xf32, #tpu.memory_space<vmem>>, vector<16x16xf32>
    %c304 = arith.constant 304 : index
    %c0_11 = arith.constant 0 : index
    %29 = vector.load %arg2[%c304, %c0_11] : memref<728x128xf32, #tpu.memory_space<vmem>>, vector<4x32xf32>
    %c312 = arith.constant 312 : index
    %c0_12 = arith.constant 0 : index
    %30 = vector.load %arg2[%c312, %c0_12] : memref<728x128xf32, #tpu.memory_space<vmem>>, vector<2x32xf32>
    %31 = vector.extract_strided_slice %30 {offsets = [0, 0], sizes = [1, 32], strides = [1, 1]} : vector<2x32xf32> to vector<1x32xf32>
    %32 = vector.extract_strided_slice %30 {offsets = [1, 0], sizes = [1, 32], strides = [1, 1]} : vector<2x32xf32> to vector<1x32xf32>
    %cst_13 = arith.constant dense<0.000000e+00> : vector<16xf32>
    %33 = vector.multi_reduction <add>, %27, %cst_13 [1] : vector<16x32xf32> to vector<16xf32>
    %34 = vector.shape_cast %33 : vector<16xf32> to vector<16x1xf32>
    %cst_14 = arith.constant 3.200000e+01 : f32
    %35 = vector.broadcast %cst_14 : f32 to vector<16x1xf32>
    %36 = arith.divf %34, %35 : vector<16x1xf32>
    %37 = vector.broadcast %36 : vector<16x1xf32> to vector<16x32xf32>
    %38 = arith.subf %27, %37 : vector<16x32xf32>
    %39 = arith.mulf %38, %38 : vector<16x32xf32>
    %cst_15 = arith.constant dense<0.000000e+00> : vector<16xf32>
    %40 = vector.multi_reduction <add>, %39, %cst_15 [1] : vector<16x32xf32> to vector<16xf32>
    %41 = vector.shape_cast %40 : vector<16xf32> to vector<16x1xf32>
    %cst_16 = arith.constant 3.200000e+01 : f32
    %42 = vector.broadcast %cst_16 : f32 to vector<16x1xf32>
    %43 = arith.divf %41, %42 : vector<16x1xf32>
    %44 = vector.broadcast %36 : vector<16x1xf32> to vector<16x32xf32>
    %45 = arith.subf %27, %44 : vector<16x32xf32>
    %cst_17 = arith.constant 9.99999974E-6 : f32
    %46 = vector.broadcast %cst_17 : f32 to vector<16x1xf32>
    %47 = arith.addf %43, %46 : vector<16x1xf32>
    %48 = math.rsqrt %47 : vector<16x1xf32>
    %49 = vector.broadcast %48 : vector<16x1xf32> to vector<16x32xf32>
    %50 = arith.mulf %45, %49 : vector<16x32xf32>
    %51 = vector.broadcast %31 : vector<1x32xf32> to vector<16x32xf32>
    %52 = arith.mulf %50, %51 : vector<16x32xf32>
    %53 = vector.broadcast %32 : vector<1x32xf32> to vector<16x32xf32>
    %54 = arith.addf %52, %53 : vector<16x32xf32>
    %c320 = arith.constant 320 : index
    %c0_18 = arith.constant 0 : index
    %55 = vector.load %arg2[%c320, %c0_18] : memref<728x128xf32, #tpu.memory_space<vmem>>, vector<32x96xf32>
    %cst_19 = arith.constant dense<0.000000e+00> : vector<16x96xf32>
    %56 = tpu.matmul %54, %55, %cst_19 {dimension_numbers = #tpu.dot_dimension_numbers<[1], [0], [0], [1], [0, 0, 1, 1], [], []>} : vector<16x32xf32>, vector<32x96xf32>, vector<16x96xf32> -> vector<16x96xf32>
    %c352 = arith.constant 352 : index
    %c0_20 = arith.constant 0 : index
    %57 = vector.load %arg2[%c352, %c0_20] : memref<728x128xf32, #tpu.memory_space<vmem>>, vector<1x96xf32>
    %58 = vector.broadcast %57 : vector<1x96xf32> to vector<16x96xf32>
    %59 = arith.addf %56, %58 : vector<16x96xf32>
    %60 = vector.extract_strided_slice %59 {offsets = [0, 0], sizes = [16, 32], strides = [1, 1]} : vector<16x96xf32> to vector<16x32xf32>
    %61 = vector.extract_strided_slice %59 {offsets = [0, 32], sizes = [16, 32], strides = [1, 1]} : vector<16x96xf32> to vector<16x32xf32>
    %62 = vector.extract_strided_slice %59 {offsets = [0, 64], sizes = [16, 32], strides = [1, 1]} : vector<16x96xf32> to vector<16x32xf32>
    %63 = vector.extract_strided_slice %29 {offsets = [0, 0], sizes = [1, 32], strides = [1, 1]} : vector<4x32xf32> to vector<1x32xf32>
    %64 = vector.broadcast %63 : vector<1x32xf32> to vector<16x32xf32>
    %65 = arith.mulf %60, %64 : vector<16x32xf32>
    %cst_21 = arith.constant dense<0.000000e+00> : vector<16x16xf32>
    %66 = tpu.matmul %65, %61, %cst_21 {dimension_numbers = #tpu.dot_dimension_numbers<[1], [1], [0], [0], [0, 0, 1, 0], [], []>} : vector<16x32xf32>, vector<16x32xf32>, vector<16x16xf32> -> vector<16x16xf32>
    %67 = arith.addf %66, %28 : vector<16x16xf32>
    %cst_22 = arith.constant dense<0xFF800000> : vector<16xf32>
    %68 = vector.multi_reduction <maximumf>, %67, %cst_22 [1] : vector<16x16xf32> to vector<16xf32>
    %69 = vector.shape_cast %68 : vector<16xf32> to vector<16x1xf32>
    %70 = vector.broadcast %69 : vector<16x1xf32> to vector<16x16xf32>
    %71 = arith.subf %67, %70 : vector<16x16xf32>
    %72 = math.exp %71 : vector<16x16xf32>
    %cst_23 = arith.constant dense<0.000000e+00> : vector<16xf32>
    %73 = vector.multi_reduction <add>, %72, %cst_23 [1] : vector<16x16xf32> to vector<16xf32>
    %74 = vector.shape_cast %73 : vector<16xf32> to vector<16x1xf32>
    %75 = tpu.reciprocal %74 {approx = true} : vector<16x1xf32> -> vector<16x1xf32>
    %76 = vector.broadcast %75 : vector<16x1xf32> to vector<16x16xf32>
    %77 = arith.mulf %72, %76 : vector<16x16xf32>
    %cst_24 = arith.constant dense<0.000000e+00> : vector<16x32xf32>
    %78 = tpu.matmul %77, %62, %cst_24 {dimension_numbers = #tpu.dot_dimension_numbers<[1], [0], [0], [1], [0, 0, 1, 1], [], []>} : vector<16x16xf32>, vector<16x32xf32>, vector<16x32xf32> -> vector<16x32xf32>
    %79 = vector.broadcast %63 : vector<1x32xf32> to vector<16x32xf32>
    %80 = arith.mulf %78, %79 : vector<16x32xf32>
    %81 = vector.extract_strided_slice %29 {offsets = [1, 0], sizes = [1, 32], strides = [1, 1]} : vector<4x32xf32> to vector<1x32xf32>
    %82 = vector.broadcast %81 : vector<1x32xf32> to vector<16x32xf32>
    %83 = arith.mulf %60, %82 : vector<16x32xf32>
    %cst_25 = arith.constant dense<0.000000e+00> : vector<16x16xf32>
    %84 = tpu.matmul %83, %61, %cst_25 {dimension_numbers = #tpu.dot_dimension_numbers<[1], [1], [0], [0], [0, 0, 1, 0], [], []>} : vector<16x32xf32>, vector<16x32xf32>, vector<16x16xf32> -> vector<16x16xf32>
    %85 = arith.addf %84, %28 : vector<16x16xf32>
    %cst_26 = arith.constant dense<0xFF800000> : vector<16xf32>
    %86 = vector.multi_reduction <maximumf>, %85, %cst_26 [1] : vector<16x16xf32> to vector<16xf32>
    %87 = vector.shape_cast %86 : vector<16xf32> to vector<16x1xf32>
    %88 = vector.broadcast %87 : vector<16x1xf32> to vector<16x16xf32>
    %89 = arith.subf %85, %88 : vector<16x16xf32>
    %90 = math.exp %89 : vector<16x16xf32>
    %cst_27 = arith.constant dense<0.000000e+00> : vector<16xf32>
    %91 = vector.multi_reduction <add>, %90, %cst_27 [1] : vector<16x16xf32> to vector<16xf32>
    %92 = vector.shape_cast %91 : vector<16xf32> to vector<16x1xf32>
    %93 = tpu.reciprocal %92 {approx = true} : vector<16x1xf32> -> vector<16x1xf32>
    %94 = vector.broadcast %93 : vector<16x1xf32> to vector<16x16xf32>
    %95 = arith.mulf %90, %94 : vector<16x16xf32>
    %cst_28 = arith.constant dense<0.000000e+00> : vector<16x32xf32>
    %96 = tpu.matmul %95, %62, %cst_28 {dimension_numbers = #tpu.dot_dimension_numbers<[1], [0], [0], [1], [0, 0, 1, 1], [], []>} : vector<16x16xf32>, vector<16x32xf32>, vector<16x32xf32> -> vector<16x32xf32>
    %97 = vector.broadcast %81 : vector<1x32xf32> to vector<16x32xf32>
    %98 = arith.mulf %96, %97 : vector<16x32xf32>
    %99 = arith.addf %80, %98 : vector<16x32xf32>
    %100 = vector.extract_strided_slice %29 {offsets = [2, 0], sizes = [1, 32], strides = [1, 1]} : vector<4x32xf32> to vector<1x32xf32>
    %101 = vector.broadcast %100 : vector<1x32xf32> to vector<16x32xf32>
    %102 = arith.mulf %60, %101 : vector<16x32xf32>
    %cst_29 = arith.constant dense<0.000000e+00> : vector<16x16xf32>
    %103 = tpu.matmul %102, %61, %cst_29 {dimension_numbers = #tpu.dot_dimension_numbers<[1], [1], [0], [0], [0, 0, 1, 0], [], []>} : vector<16x32xf32>, vector<16x32xf32>, vector<16x16xf32> -> vector<16x16xf32>
    %104 = arith.addf %103, %28 : vector<16x16xf32>
    %cst_30 = arith.constant dense<0xFF800000> : vector<16xf32>
    %105 = vector.multi_reduction <maximumf>, %104, %cst_30 [1] : vector<16x16xf32> to vector<16xf32>
    %106 = vector.shape_cast %105 : vector<16xf32> to vector<16x1xf32>
    %107 = vector.broadcast %106 : vector<16x1xf32> to vector<16x16xf32>
    %108 = arith.subf %104, %107 : vector<16x16xf32>
    %109 = math.exp %108 : vector<16x16xf32>
    %cst_31 = arith.constant dense<0.000000e+00> : vector<16xf32>
    %110 = vector.multi_reduction <add>, %109, %cst_31 [1] : vector<16x16xf32> to vector<16xf32>
    %111 = vector.shape_cast %110 : vector<16xf32> to vector<16x1xf32>
    %112 = tpu.reciprocal %111 {approx = true} : vector<16x1xf32> -> vector<16x1xf32>
    %113 = vector.broadcast %112 : vector<16x1xf32> to vector<16x16xf32>
    %114 = arith.mulf %109, %113 : vector<16x16xf32>
    %cst_32 = arith.constant dense<0.000000e+00> : vector<16x32xf32>
    %115 = tpu.matmul %114, %62, %cst_32 {dimension_numbers = #tpu.dot_dimension_numbers<[1], [0], [0], [1], [0, 0, 1, 1], [], []>} : vector<16x16xf32>, vector<16x32xf32>, vector<16x32xf32> -> vector<16x32xf32>
    %116 = vector.broadcast %100 : vector<1x32xf32> to vector<16x32xf32>
    %117 = arith.mulf %115, %116 : vector<16x32xf32>
    %118 = arith.addf %99, %117 : vector<16x32xf32>
    %119 = vector.extract_strided_slice %29 {offsets = [3, 0], sizes = [1, 32], strides = [1, 1]} : vector<4x32xf32> to vector<1x32xf32>
    %120 = vector.broadcast %119 : vector<1x32xf32> to vector<16x32xf32>
    %121 = arith.mulf %60, %120 : vector<16x32xf32>
    %cst_33 = arith.constant dense<0.000000e+00> : vector<16x16xf32>
    %122 = tpu.matmul %121, %61, %cst_33 {dimension_numbers = #tpu.dot_dimension_numbers<[1], [1], [0], [0], [0, 0, 1, 0], [], []>} : vector<16x32xf32>, vector<16x32xf32>, vector<16x16xf32> -> vector<16x16xf32>
    %123 = arith.addf %122, %28 : vector<16x16xf32>
    %cst_34 = arith.constant dense<0xFF800000> : vector<16xf32>
    %124 = vector.multi_reduction <maximumf>, %123, %cst_34 [1] : vector<16x16xf32> to vector<16xf32>
    %125 = vector.shape_cast %124 : vector<16xf32> to vector<16x1xf32>
    %126 = vector.broadcast %125 : vector<16x1xf32> to vector<16x16xf32>
    %127 = arith.subf %123, %126 : vector<16x16xf32>
    %128 = math.exp %127 : vector<16x16xf32>
    %cst_35 = arith.constant dense<0.000000e+00> : vector<16xf32>
    %129 = vector.multi_reduction <add>, %128, %cst_35 [1] : vector<16x16xf32> to vector<16xf32>
    %130 = vector.shape_cast %129 : vector<16xf32> to vector<16x1xf32>
    %131 = tpu.reciprocal %130 {approx = true} : vector<16x1xf32> -> vector<16x1xf32>
    %132 = vector.broadcast %131 : vector<16x1xf32> to vector<16x16xf32>
    %133 = arith.mulf %128, %132 : vector<16x16xf32>
    %cst_36 = arith.constant dense<0.000000e+00> : vector<16x32xf32>
    %134 = tpu.matmul %133, %62, %cst_36 {dimension_numbers = #tpu.dot_dimension_numbers<[1], [0], [0], [1], [0, 0, 1, 1], [], []>} : vector<16x16xf32>, vector<16x32xf32>, vector<16x32xf32> -> vector<16x32xf32>
    %135 = vector.broadcast %119 : vector<1x32xf32> to vector<16x32xf32>
    %136 = arith.mulf %134, %135 : vector<16x32xf32>
    %137 = arith.addf %118, %136 : vector<16x32xf32>
    %c360 = arith.constant 360 : index
    %c0_37 = arith.constant 0 : index
    %138 = vector.load %arg2[%c360, %c0_37] : memref<728x128xf32, #tpu.memory_space<vmem>>, vector<32x32xf32>
    %cst_38 = arith.constant dense<0.000000e+00> : vector<16x32xf32>
    %139 = tpu.matmul %137, %138, %cst_38 {dimension_numbers = #tpu.dot_dimension_numbers<[1], [0], [0], [1], [0, 0, 1, 1], [], []>} : vector<16x32xf32>, vector<32x32xf32>, vector<16x32xf32> -> vector<16x32xf32>
    %c392 = arith.constant 392 : index
    %c0_39 = arith.constant 0 : index
    %140 = vector.load %arg2[%c392, %c0_39] : memref<728x128xf32, #tpu.memory_space<vmem>>, vector<1x32xf32>
    %141 = vector.broadcast %140 : vector<1x32xf32> to vector<16x32xf32>
    %142 = arith.addf %139, %141 : vector<16x32xf32>
    %143 = arith.addf %27, %142 : vector<16x32xf32>
    %c400 = arith.constant 400 : index
    %c0_40 = arith.constant 0 : index
    %144 = vector.load %arg2[%c400, %c0_40] : memref<728x128xf32, #tpu.memory_space<vmem>>, vector<2x32xf32>
    %145 = vector.extract_strided_slice %144 {offsets = [0, 0], sizes = [1, 32], strides = [1, 1]} : vector<2x32xf32> to vector<1x32xf32>
    %146 = vector.extract_strided_slice %144 {offsets = [1, 0], sizes = [1, 32], strides = [1, 1]} : vector<2x32xf32> to vector<1x32xf32>
    %cst_41 = arith.constant dense<0.000000e+00> : vector<16xf32>
    %147 = vector.multi_reduction <add>, %143, %cst_41 [1] : vector<16x32xf32> to vector<16xf32>
    %148 = vector.shape_cast %147 : vector<16xf32> to vector<16x1xf32>
    %cst_42 = arith.constant 3.200000e+01 : f32
    %149 = vector.broadcast %cst_42 : f32 to vector<16x1xf32>
    %150 = arith.divf %148, %149 : vector<16x1xf32>
    %151 = vector.broadcast %150 : vector<16x1xf32> to vector<16x32xf32>
    %152 = arith.subf %143, %151 : vector<16x32xf32>
    %153 = arith.mulf %152, %152 : vector<16x32xf32>
    %cst_43 = arith.constant dense<0.000000e+00> : vector<16xf32>
    %154 = vector.multi_reduction <add>, %153, %cst_43 [1] : vector<16x32xf32> to vector<16xf32>
    %155 = vector.shape_cast %154 : vector<16xf32> to vector<16x1xf32>
    %cst_44 = arith.constant 3.200000e+01 : f32
    %156 = vector.broadcast %cst_44 : f32 to vector<16x1xf32>
    %157 = arith.divf %155, %156 : vector<16x1xf32>
    %158 = vector.broadcast %150 : vector<16x1xf32> to vector<16x32xf32>
    %159 = arith.subf %143, %158 : vector<16x32xf32>
    %cst_45 = arith.constant 9.99999974E-6 : f32
    %160 = vector.broadcast %cst_45 : f32 to vector<16x1xf32>
    %161 = arith.addf %157, %160 : vector<16x1xf32>
    %162 = math.rsqrt %161 : vector<16x1xf32>
    %163 = vector.broadcast %162 : vector<16x1xf32> to vector<16x32xf32>
    %164 = arith.mulf %159, %163 : vector<16x32xf32>
    %165 = vector.broadcast %145 : vector<1x32xf32> to vector<16x32xf32>
    %166 = arith.mulf %164, %165 : vector<16x32xf32>
    %167 = vector.broadcast %146 : vector<1x32xf32> to vector<16x32xf32>
    %168 = arith.addf %166, %167 : vector<16x32xf32>
    %c408 = arith.constant 408 : index
    %c0_46 = arith.constant 0 : index
    %169 = vector.load %arg2[%c408, %c0_46] : memref<728x128xf32, #tpu.memory_space<vmem>>, vector<32x64xf32>
    %cst_47 = arith.constant dense<0.000000e+00> : vector<16x64xf32>
    %170 = tpu.matmul %168, %169, %cst_47 {dimension_numbers = #tpu.dot_dimension_numbers<[1], [0], [0], [1], [0, 0, 1, 1], [], []>} : vector<16x32xf32>, vector<32x64xf32>, vector<16x64xf32> -> vector<16x64xf32>
    %c440 = arith.constant 440 : index
    %c0_48 = arith.constant 0 : index
    %171 = vector.load %arg2[%c440, %c0_48] : memref<728x128xf32, #tpu.memory_space<vmem>>, vector<1x64xf32>
    %172 = vector.broadcast %171 : vector<1x64xf32> to vector<16x64xf32>
    %173 = arith.addf %170, %172 : vector<16x64xf32>
    %cst_49 = arith.constant 1.702000e+00 : f32
    %174 = vector.broadcast %cst_49 : f32 to vector<16x64xf32>
    %175 = arith.mulf %174, %173 : vector<16x64xf32>
    %176 = arith.negf %175 : vector<16x64xf32>
    %177 = math.exp %176 : vector<16x64xf32>
    %cst_50 = arith.constant 1.000000e+00 : f32
    %178 = vector.broadcast %cst_50 : f32 to vector<16x64xf32>
    %179 = arith.addf %178, %177 : vector<16x64xf32>
    %180 = arith.divf %178, %179 : vector<16x64xf32>
    %181 = arith.mulf %173, %180 : vector<16x64xf32>
    %c448 = arith.constant 448 : index
    %c0_51 = arith.constant 0 : index
    %182 = vector.load %arg2[%c448, %c0_51] : memref<728x128xf32, #tpu.memory_space<vmem>>, vector<64x32xf32>
    %cst_52 = arith.constant dense<0.000000e+00> : vector<16x32xf32>
    %183 = tpu.matmul %181, %182, %cst_52 {dimension_numbers = #tpu.dot_dimension_numbers<[1], [0], [0], [1], [0, 0, 1, 1], [], []>} : vector<16x64xf32>, vector<64x32xf32>, vector<16x32xf32> -> vector<16x32xf32>
    %c512 = arith.constant 512 : index
    %c0_53 = arith.constant 0 : index
    %184 = vector.load %arg2[%c512, %c0_53] : memref<728x128xf32, #tpu.memory_space<vmem>>, vector<1x32xf32>
    %185 = vector.broadcast %184 : vector<1x32xf32> to vector<16x32xf32>
    %186 = arith.addf %183, %185 : vector<16x32xf32>
    %187 = arith.addf %143, %186 : vector<16x32xf32>
    %c520 = arith.constant 520 : index
    %c0_54 = arith.constant 0 : index
    %188 = vector.load %arg2[%c520, %c0_54] : memref<728x128xf32, #tpu.memory_space<vmem>>, vector<2x32xf32>
    %189 = vector.extract_strided_slice %188 {offsets = [0, 0], sizes = [1, 32], strides = [1, 1]} : vector<2x32xf32> to vector<1x32xf32>
    %190 = vector.extract_strided_slice %188 {offsets = [1, 0], sizes = [1, 32], strides = [1, 1]} : vector<2x32xf32> to vector<1x32xf32>
    %cst_55 = arith.constant dense<0.000000e+00> : vector<16xf32>
    %191 = vector.multi_reduction <add>, %187, %cst_55 [1] : vector<16x32xf32> to vector<16xf32>
    %192 = vector.shape_cast %191 : vector<16xf32> to vector<16x1xf32>
    %cst_56 = arith.constant 3.200000e+01 : f32
    %193 = vector.broadcast %cst_56 : f32 to vector<16x1xf32>
    %194 = arith.divf %192, %193 : vector<16x1xf32>
    %195 = vector.broadcast %194 : vector<16x1xf32> to vector<16x32xf32>
    %196 = arith.subf %187, %195 : vector<16x32xf32>
    %197 = arith.mulf %196, %196 : vector<16x32xf32>
    %cst_57 = arith.constant dense<0.000000e+00> : vector<16xf32>
    %198 = vector.multi_reduction <add>, %197, %cst_57 [1] : vector<16x32xf32> to vector<16xf32>
    %199 = vector.shape_cast %198 : vector<16xf32> to vector<16x1xf32>
    %cst_58 = arith.constant 3.200000e+01 : f32
    %200 = vector.broadcast %cst_58 : f32 to vector<16x1xf32>
    %201 = arith.divf %199, %200 : vector<16x1xf32>
    %202 = vector.broadcast %194 : vector<16x1xf32> to vector<16x32xf32>
    %203 = arith.subf %187, %202 : vector<16x32xf32>
    %cst_59 = arith.constant 9.99999974E-6 : f32
    %204 = vector.broadcast %cst_59 : f32 to vector<16x1xf32>
    %205 = arith.addf %201, %204 : vector<16x1xf32>
    %206 = math.rsqrt %205 : vector<16x1xf32>
    %207 = vector.broadcast %206 : vector<16x1xf32> to vector<16x32xf32>
    %208 = arith.mulf %203, %207 : vector<16x32xf32>
    %209 = vector.broadcast %189 : vector<1x32xf32> to vector<16x32xf32>
    %210 = arith.mulf %208, %209 : vector<16x32xf32>
    %211 = vector.broadcast %190 : vector<1x32xf32> to vector<16x32xf32>
    %212 = arith.addf %210, %211 : vector<16x32xf32>
    %c528 = arith.constant 528 : index
    %c0_60 = arith.constant 0 : index
    %213 = vector.load %arg2[%c528, %c0_60] : memref<728x128xf32, #tpu.memory_space<vmem>>, vector<32x96xf32>
    %cst_61 = arith.constant dense<0.000000e+00> : vector<16x96xf32>
    %214 = tpu.matmul %212, %213, %cst_61 {dimension_numbers = #tpu.dot_dimension_numbers<[1], [0], [0], [1], [0, 0, 1, 1], [], []>} : vector<16x32xf32>, vector<32x96xf32>, vector<16x96xf32> -> vector<16x96xf32>
    %c560 = arith.constant 560 : index
    %c0_62 = arith.constant 0 : index
    %215 = vector.load %arg2[%c560, %c0_62] : memref<728x128xf32, #tpu.memory_space<vmem>>, vector<1x96xf32>
    %216 = vector.broadcast %215 : vector<1x96xf32> to vector<16x96xf32>
    %217 = arith.addf %214, %216 : vector<16x96xf32>
    %218 = vector.extract_strided_slice %217 {offsets = [0, 0], sizes = [16, 32], strides = [1, 1]} : vector<16x96xf32> to vector<16x32xf32>
    %219 = vector.extract_strided_slice %217 {offsets = [0, 32], sizes = [16, 32], strides = [1, 1]} : vector<16x96xf32> to vector<16x32xf32>
    %220 = vector.extract_strided_slice %217 {offsets = [0, 64], sizes = [16, 32], strides = [1, 1]} : vector<16x96xf32> to vector<16x32xf32>
    %221 = vector.extract_strided_slice %29 {offsets = [0, 0], sizes = [1, 32], strides = [1, 1]} : vector<4x32xf32> to vector<1x32xf32>
    %222 = vector.broadcast %221 : vector<1x32xf32> to vector<16x32xf32>
    %223 = arith.mulf %218, %222 : vector<16x32xf32>
    %cst_63 = arith.constant dense<0.000000e+00> : vector<16x16xf32>
    %224 = tpu.matmul %223, %219, %cst_63 {dimension_numbers = #tpu.dot_dimension_numbers<[1], [1], [0], [0], [0, 0, 1, 0], [], []>} : vector<16x32xf32>, vector<16x32xf32>, vector<16x16xf32> -> vector<16x16xf32>
    %225 = arith.addf %224, %28 : vector<16x16xf32>
    %cst_64 = arith.constant dense<0xFF800000> : vector<16xf32>
    %226 = vector.multi_reduction <maximumf>, %225, %cst_64 [1] : vector<16x16xf32> to vector<16xf32>
    %227 = vector.shape_cast %226 : vector<16xf32> to vector<16x1xf32>
    %228 = vector.broadcast %227 : vector<16x1xf32> to vector<16x16xf32>
    %229 = arith.subf %225, %228 : vector<16x16xf32>
    %230 = math.exp %229 : vector<16x16xf32>
    %cst_65 = arith.constant dense<0.000000e+00> : vector<16xf32>
    %231 = vector.multi_reduction <add>, %230, %cst_65 [1] : vector<16x16xf32> to vector<16xf32>
    %232 = vector.shape_cast %231 : vector<16xf32> to vector<16x1xf32>
    %233 = tpu.reciprocal %232 {approx = true} : vector<16x1xf32> -> vector<16x1xf32>
    %234 = vector.broadcast %233 : vector<16x1xf32> to vector<16x16xf32>
    %235 = arith.mulf %230, %234 : vector<16x16xf32>
    %cst_66 = arith.constant dense<0.000000e+00> : vector<16x32xf32>
    %236 = tpu.matmul %235, %220, %cst_66 {dimension_numbers = #tpu.dot_dimension_numbers<[1], [0], [0], [1], [0, 0, 1, 1], [], []>} : vector<16x16xf32>, vector<16x32xf32>, vector<16x32xf32> -> vector<16x32xf32>
    %237 = vector.broadcast %221 : vector<1x32xf32> to vector<16x32xf32>
    %238 = arith.mulf %236, %237 : vector<16x32xf32>
    %239 = vector.extract_strided_slice %29 {offsets = [1, 0], sizes = [1, 32], strides = [1, 1]} : vector<4x32xf32> to vector<1x32xf32>
    %240 = vector.broadcast %239 : vector<1x32xf32> to vector<16x32xf32>
    %241 = arith.mulf %218, %240 : vector<16x32xf32>
    %cst_67 = arith.constant dense<0.000000e+00> : vector<16x16xf32>
    %242 = tpu.matmul %241, %219, %cst_67 {dimension_numbers = #tpu.dot_dimension_numbers<[1], [1], [0], [0], [0, 0, 1, 0], [], []>} : vector<16x32xf32>, vector<16x32xf32>, vector<16x16xf32> -> vector<16x16xf32>
    %243 = arith.addf %242, %28 : vector<16x16xf32>
    %cst_68 = arith.constant dense<0xFF800000> : vector<16xf32>
    %244 = vector.multi_reduction <maximumf>, %243, %cst_68 [1] : vector<16x16xf32> to vector<16xf32>
    %245 = vector.shape_cast %244 : vector<16xf32> to vector<16x1xf32>
    %246 = vector.broadcast %245 : vector<16x1xf32> to vector<16x16xf32>
    %247 = arith.subf %243, %246 : vector<16x16xf32>
    %248 = math.exp %247 : vector<16x16xf32>
    %cst_69 = arith.constant dense<0.000000e+00> : vector<16xf32>
    %249 = vector.multi_reduction <add>, %248, %cst_69 [1] : vector<16x16xf32> to vector<16xf32>
    %250 = vector.shape_cast %249 : vector<16xf32> to vector<16x1xf32>
    %251 = tpu.reciprocal %250 {approx = true} : vector<16x1xf32> -> vector<16x1xf32>
    %252 = vector.broadcast %251 : vector<16x1xf32> to vector<16x16xf32>
    %253 = arith.mulf %248, %252 : vector<16x16xf32>
    %cst_70 = arith.constant dense<0.000000e+00> : vector<16x32xf32>
    %254 = tpu.matmul %253, %220, %cst_70 {dimension_numbers = #tpu.dot_dimension_numbers<[1], [0], [0], [1], [0, 0, 1, 1], [], []>} : vector<16x16xf32>, vector<16x32xf32>, vector<16x32xf32> -> vector<16x32xf32>
    %255 = vector.broadcast %239 : vector<1x32xf32> to vector<16x32xf32>
    %256 = arith.mulf %254, %255 : vector<16x32xf32>
    %257 = arith.addf %238, %256 : vector<16x32xf32>
    %258 = vector.extract_strided_slice %29 {offsets = [2, 0], sizes = [1, 32], strides = [1, 1]} : vector<4x32xf32> to vector<1x32xf32>
    %259 = vector.broadcast %258 : vector<1x32xf32> to vector<16x32xf32>
    %260 = arith.mulf %218, %259 : vector<16x32xf32>
    %cst_71 = arith.constant dense<0.000000e+00> : vector<16x16xf32>
    %261 = tpu.matmul %260, %219, %cst_71 {dimension_numbers = #tpu.dot_dimension_numbers<[1], [1], [0], [0], [0, 0, 1, 0], [], []>} : vector<16x32xf32>, vector<16x32xf32>, vector<16x16xf32> -> vector<16x16xf32>
    %262 = arith.addf %261, %28 : vector<16x16xf32>
    %cst_72 = arith.constant dense<0xFF800000> : vector<16xf32>
    %263 = vector.multi_reduction <maximumf>, %262, %cst_72 [1] : vector<16x16xf32> to vector<16xf32>
    %264 = vector.shape_cast %263 : vector<16xf32> to vector<16x1xf32>
    %265 = vector.broadcast %264 : vector<16x1xf32> to vector<16x16xf32>
    %266 = arith.subf %262, %265 : vector<16x16xf32>
    %267 = math.exp %266 : vector<16x16xf32>
    %cst_73 = arith.constant dense<0.000000e+00> : vector<16xf32>
    %268 = vector.multi_reduction <add>, %267, %cst_73 [1] : vector<16x16xf32> to vector<16xf32>
    %269 = vector.shape_cast %268 : vector<16xf32> to vector<16x1xf32>
    %270 = tpu.reciprocal %269 {approx = true} : vector<16x1xf32> -> vector<16x1xf32>
    %271 = vector.broadcast %270 : vector<16x1xf32> to vector<16x16xf32>
    %272 = arith.mulf %267, %271 : vector<16x16xf32>
    %cst_74 = arith.constant dense<0.000000e+00> : vector<16x32xf32>
    %273 = tpu.matmul %272, %220, %cst_74 {dimension_numbers = #tpu.dot_dimension_numbers<[1], [0], [0], [1], [0, 0, 1, 1], [], []>} : vector<16x16xf32>, vector<16x32xf32>, vector<16x32xf32> -> vector<16x32xf32>
    %274 = vector.broadcast %258 : vector<1x32xf32> to vector<16x32xf32>
    %275 = arith.mulf %273, %274 : vector<16x32xf32>
    %276 = arith.addf %257, %275 : vector<16x32xf32>
    %277 = vector.extract_strided_slice %29 {offsets = [3, 0], sizes = [1, 32], strides = [1, 1]} : vector<4x32xf32> to vector<1x32xf32>
    %278 = vector.broadcast %277 : vector<1x32xf32> to vector<16x32xf32>
    %279 = arith.mulf %218, %278 : vector<16x32xf32>
    %cst_75 = arith.constant dense<0.000000e+00> : vector<16x16xf32>
    %280 = tpu.matmul %279, %219, %cst_75 {dimension_numbers = #tpu.dot_dimension_numbers<[1], [1], [0], [0], [0, 0, 1, 0], [], []>} : vector<16x32xf32>, vector<16x32xf32>, vector<16x16xf32> -> vector<16x16xf32>
    %281 = arith.addf %280, %28 : vector<16x16xf32>
    %cst_76 = arith.constant dense<0xFF800000> : vector<16xf32>
    %282 = vector.multi_reduction <maximumf>, %281, %cst_76 [1] : vector<16x16xf32> to vector<16xf32>
    %283 = vector.shape_cast %282 : vector<16xf32> to vector<16x1xf32>
    %284 = vector.broadcast %283 : vector<16x1xf32> to vector<16x16xf32>
    %285 = arith.subf %281, %284 : vector<16x16xf32>
    %286 = math.exp %285 : vector<16x16xf32>
    %cst_77 = arith.constant dense<0.000000e+00> : vector<16xf32>
    %287 = vector.multi_reduction <add>, %286, %cst_77 [1] : vector<16x16xf32> to vector<16xf32>
    %288 = vector.shape_cast %287 : vector<16xf32> to vector<16x1xf32>
    %289 = tpu.reciprocal %288 {approx = true} : vector<16x1xf32> -> vector<16x1xf32>
    %290 = vector.broadcast %289 : vector<16x1xf32> to vector<16x16xf32>
    %291 = arith.mulf %286, %290 : vector<16x16xf32>
    %cst_78 = arith.constant dense<0.000000e+00> : vector<16x32xf32>
    %292 = tpu.matmul %291, %220, %cst_78 {dimension_numbers = #tpu.dot_dimension_numbers<[1], [0], [0], [1], [0, 0, 1, 1], [], []>} : vector<16x16xf32>, vector<16x32xf32>, vector<16x32xf32> -> vector<16x32xf32>
    %293 = vector.broadcast %277 : vector<1x32xf32> to vector<16x32xf32>
    %294 = arith.mulf %292, %293 : vector<16x32xf32>
    %295 = arith.addf %276, %294 : vector<16x32xf32>
    %c568 = arith.constant 568 : index
    %c0_79 = arith.constant 0 : index
    %296 = vector.load %arg2[%c568, %c0_79] : memref<728x128xf32, #tpu.memory_space<vmem>>, vector<32x32xf32>
    %cst_80 = arith.constant dense<0.000000e+00> : vector<16x32xf32>
    %297 = tpu.matmul %295, %296, %cst_80 {dimension_numbers = #tpu.dot_dimension_numbers<[1], [0], [0], [1], [0, 0, 1, 1], [], []>} : vector<16x32xf32>, vector<32x32xf32>, vector<16x32xf32> -> vector<16x32xf32>
    %c600 = arith.constant 600 : index
    %c0_81 = arith.constant 0 : index
    %298 = vector.load %arg2[%c600, %c0_81] : memref<728x128xf32, #tpu.memory_space<vmem>>, vector<1x32xf32>
    %299 = vector.broadcast %298 : vector<1x32xf32> to vector<16x32xf32>
    %300 = arith.addf %297, %299 : vector<16x32xf32>
    %301 = arith.addf %187, %300 : vector<16x32xf32>
    %c608 = arith.constant 608 : index
    %c0_82 = arith.constant 0 : index
    %302 = vector.load %arg2[%c608, %c0_82] : memref<728x128xf32, #tpu.memory_space<vmem>>, vector<2x32xf32>
    %303 = vector.extract_strided_slice %302 {offsets = [0, 0], sizes = [1, 32], strides = [1, 1]} : vector<2x32xf32> to vector<1x32xf32>
    %304 = vector.extract_strided_slice %302 {offsets = [1, 0], sizes = [1, 32], strides = [1, 1]} : vector<2x32xf32> to vector<1x32xf32>
    %cst_83 = arith.constant dense<0.000000e+00> : vector<16xf32>
    %305 = vector.multi_reduction <add>, %301, %cst_83 [1] : vector<16x32xf32> to vector<16xf32>
    %306 = vector.shape_cast %305 : vector<16xf32> to vector<16x1xf32>
    %cst_84 = arith.constant 3.200000e+01 : f32
    %307 = vector.broadcast %cst_84 : f32 to vector<16x1xf32>
    %308 = arith.divf %306, %307 : vector<16x1xf32>
    %309 = vector.broadcast %308 : vector<16x1xf32> to vector<16x32xf32>
    %310 = arith.subf %301, %309 : vector<16x32xf32>
    %311 = arith.mulf %310, %310 : vector<16x32xf32>
    %cst_85 = arith.constant dense<0.000000e+00> : vector<16xf32>
    %312 = vector.multi_reduction <add>, %311, %cst_85 [1] : vector<16x32xf32> to vector<16xf32>
    %313 = vector.shape_cast %312 : vector<16xf32> to vector<16x1xf32>
    %cst_86 = arith.constant 3.200000e+01 : f32
    %314 = vector.broadcast %cst_86 : f32 to vector<16x1xf32>
    %315 = arith.divf %313, %314 : vector<16x1xf32>
    %316 = vector.broadcast %308 : vector<16x1xf32> to vector<16x32xf32>
    %317 = arith.subf %301, %316 : vector<16x32xf32>
    %cst_87 = arith.constant 9.99999974E-6 : f32
    %318 = vector.broadcast %cst_87 : f32 to vector<16x1xf32>
    %319 = arith.addf %315, %318 : vector<16x1xf32>
    %320 = math.rsqrt %319 : vector<16x1xf32>
    %321 = vector.broadcast %320 : vector<16x1xf32> to vector<16x32xf32>
    %322 = arith.mulf %317, %321 : vector<16x32xf32>
    %323 = vector.broadcast %303 : vector<1x32xf32> to vector<16x32xf32>
    %324 = arith.mulf %322, %323 : vector<16x32xf32>
    %325 = vector.broadcast %304 : vector<1x32xf32> to vector<16x32xf32>
    %326 = arith.addf %324, %325 : vector<16x32xf32>
    %c616 = arith.constant 616 : index
    %c0_88 = arith.constant 0 : index
    %327 = vector.load %arg2[%c616, %c0_88] : memref<728x128xf32, #tpu.memory_space<vmem>>, vector<32x64xf32>
    %cst_89 = arith.constant dense<0.000000e+00> : vector<16x64xf32>
    %328 = tpu.matmul %326, %327, %cst_89 {dimension_numbers = #tpu.dot_dimension_numbers<[1], [0], [0], [1], [0, 0, 1, 1], [], []>} : vector<16x32xf32>, vector<32x64xf32>, vector<16x64xf32> -> vector<16x64xf32>
    %c648 = arith.constant 648 : index
    %c0_90 = arith.constant 0 : index
    %329 = vector.load %arg2[%c648, %c0_90] : memref<728x128xf32, #tpu.memory_space<vmem>>, vector<1x64xf32>
    %330 = vector.broadcast %329 : vector<1x64xf32> to vector<16x64xf32>
    %331 = arith.addf %328, %330 : vector<16x64xf32>
    %cst_91 = arith.constant 1.702000e+00 : f32
    %332 = vector.broadcast %cst_91 : f32 to vector<16x64xf32>
    %333 = arith.mulf %332, %331 : vector<16x64xf32>
    %334 = arith.negf %333 : vector<16x64xf32>
    %335 = math.exp %334 : vector<16x64xf32>
    %cst_92 = arith.constant 1.000000e+00 : f32
    %336 = vector.broadcast %cst_92 : f32 to vector<16x64xf32>
    %337 = arith.addf %336, %335 : vector<16x64xf32>
    %338 = arith.divf %336, %337 : vector<16x64xf32>
    %339 = arith.mulf %331, %338 : vector<16x64xf32>
    %c656 = arith.constant 656 : index
    %c0_93 = arith.constant 0 : index
    %340 = vector.load %arg2[%c656, %c0_93] : memref<728x128xf32, #tpu.memory_space<vmem>>, vector<64x32xf32>
    %cst_94 = arith.constant dense<0.000000e+00> : vector<16x32xf32>
    %341 = tpu.matmul %339, %340, %cst_94 {dimension_numbers = #tpu.dot_dimension_numbers<[1], [0], [0], [1], [0, 0, 1, 1], [], []>} : vector<16x64xf32>, vector<64x32xf32>, vector<16x32xf32> -> vector<16x32xf32>
    %c720 = arith.constant 720 : index
    %c0_95 = arith.constant 0 : index
    %342 = vector.load %arg2[%c720, %c0_95] : memref<728x128xf32, #tpu.memory_space<vmem>>, vector<1x32xf32>
    %343 = vector.broadcast %342 : vector<1x32xf32> to vector<16x32xf32>
    %344 = arith.addf %341, %343 : vector<16x32xf32>
    %345 = arith.addf %301, %344 : vector<16x32xf32>
    %c16 = arith.constant 16 : index
    %c0_96 = arith.constant 0 : index
    %346 = vector.load %arg1[%c16, %c0_96] : memref<24x128xf32, #tpu.memory_space<vmem>>, vector<8x16xf32>
    %cst_97 = arith.constant dense<0.000000e+00> : vector<8x32xf32>
    %347 = tpu.matmul %346, %345, %cst_97 {dimension_numbers = #tpu.dot_dimension_numbers<[1], [0], [0], [1], [0, 0, 1, 1], [], []>} : vector<8x16xf32>, vector<16x32xf32>, vector<8x32xf32> -> vector<8x32xf32>
    %c264 = arith.constant 264 : index
    %c0_98 = arith.constant 0 : index
    %348 = vector.load %arg2[%c264, %c0_98] : memref<728x128xf32, #tpu.memory_space<vmem>>, vector<2x32xf32>
    %349 = vector.extract_strided_slice %348 {offsets = [0, 0], sizes = [1, 32], strides = [1, 1]} : vector<2x32xf32> to vector<1x32xf32>
    %350 = vector.extract_strided_slice %348 {offsets = [1, 0], sizes = [1, 32], strides = [1, 1]} : vector<2x32xf32> to vector<1x32xf32>
    %cst_99 = arith.constant dense<0.000000e+00> : vector<8xf32>
    %351 = vector.multi_reduction <add>, %347, %cst_99 [1] : vector<8x32xf32> to vector<8xf32>
    %352 = vector.shape_cast %351 : vector<8xf32> to vector<8x1xf32>
    %cst_100 = arith.constant 3.200000e+01 : f32
    %353 = vector.broadcast %cst_100 : f32 to vector<8x1xf32>
    %354 = arith.divf %352, %353 : vector<8x1xf32>
    %355 = vector.broadcast %354 : vector<8x1xf32> to vector<8x32xf32>
    %356 = arith.subf %347, %355 : vector<8x32xf32>
    %357 = arith.mulf %356, %356 : vector<8x32xf32>
    %cst_101 = arith.constant dense<0.000000e+00> : vector<8xf32>
    %358 = vector.multi_reduction <add>, %357, %cst_101 [1] : vector<8x32xf32> to vector<8xf32>
    %359 = vector.shape_cast %358 : vector<8xf32> to vector<8x1xf32>
    %cst_102 = arith.constant 3.200000e+01 : f32
    %360 = vector.broadcast %cst_102 : f32 to vector<8x1xf32>
    %361 = arith.divf %359, %360 : vector<8x1xf32>
    %362 = vector.broadcast %354 : vector<8x1xf32> to vector<8x32xf32>
    %363 = arith.subf %347, %362 : vector<8x32xf32>
    %cst_103 = arith.constant 9.99999974E-6 : f32
    %364 = vector.broadcast %cst_103 : f32 to vector<8x1xf32>
    %365 = arith.addf %361, %364 : vector<8x1xf32>
    %366 = math.rsqrt %365 : vector<8x1xf32>
    %367 = vector.broadcast %366 : vector<8x1xf32> to vector<8x32xf32>
    %368 = arith.mulf %363, %367 : vector<8x32xf32>
    %369 = vector.broadcast %349 : vector<1x32xf32> to vector<8x32xf32>
    %370 = arith.mulf %368, %369 : vector<8x32xf32>
    %371 = vector.broadcast %350 : vector<1x32xf32> to vector<8x32xf32>
    %372 = arith.addf %370, %371 : vector<8x32xf32>
    %c272 = arith.constant 272 : index
    %c0_104 = arith.constant 0 : index
    %373 = vector.load %arg2[%c272, %c0_104] : memref<728x128xf32, #tpu.memory_space<vmem>>, vector<32x128xf32>
    %cst_105 = arith.constant dense<0.000000e+00> : vector<8x128xf32>
    %374 = tpu.matmul %372, %373, %cst_105 {dimension_numbers = #tpu.dot_dimension_numbers<[1], [0], [0], [1], [0, 0, 1, 1], [], []>} : vector<8x32xf32>, vector<32x128xf32>, vector<8x128xf32> -> vector<8x128xf32>
    %c0_106 = arith.constant 0 : index
    %c0_107 = arith.constant 0 : index
    %375 = vector.load %arg3[%c0_106, %c0_107] : memref<8x128xf32, #tpu.memory_space<vmem>>, vector<8x128xf32>
    tpu.vector_store %arg3[%c0_106, %c0_107], %374 {strides = array<i32>} : memref<8x128xf32, #tpu.memory_space<vmem>>, vector<8x128xf32>,
    return
  }
}

</mosaic_0001>

<bundles_post_ra>
// kernel: _clip_forward.1
= control target key start
LH: loop header
LB: loop body
LE: loop exit
PB: predicated region body
PF: predicated region fallthrough
CT: control target
= control target key end

     0   :  { %vm126_vm0 = vcmask 261120   ;;  %s3645_s18 = smov 96   ;;  %vm395_vm2 = vcmask 130048   ;;  %s3646_s23 = smov 64   ;;  %vm1339_vm3 = vcmask 523264   ;;  %vm3648_vm4 = vmmov 0   ;;  %s4310_s2 = inlined_call_operand.vmem [shape: f32[728,128], index: 2, kind: input, shape index: {}]   ;;  %s4311_s0 = inlined_call_operand.vmem [shape: f32[16,256], index: 0, kind: input, shape index: {}]   ;;  %s4312_s1 = inlined_call_operand.vmem [shape: f32[24,128], index: 1, kind: input, shape index: {}]   ;;  %s4313_s3 = inlined_call_operand.vmem [shape: f32[8,128], index: 3, kind: output, shape index: {}]  }
   0x1   :  { %v34_v0 = vld [vmem:[%s4310_s2 + $0x80] sm:$0xff]  ;;  %v35_v1 = vld [vmem:[%s4310_s2 + $0x88] sm:$0xff]  ;;  %v36_v5 = vld [vmem:[%s4310_s2 + $0x90] sm:$0xff] }
   0x2   :  { %v18_v2 = vld [vmem:[%s4310_s2] sm:$0xff]  ;;  %v3317_v3 = vpack.c.bf16 %v35_v1, %v34_v0  ;;  %v19_v4 = vld [vmem:[%s4310_s2 + $0x8] sm:$0xff]  ;;  %v37_v6 = vld [vmem:[%s4310_s2 + $0x98] sm:$0xff] }
   0x3   :  { %v3319_v7 = vpack.c.bf16 %v19_v4, %v18_v2  ;;  %v3321_v8 = vpack.c.bf16 %v37_v6, %v36_v5  ;;  %v20_v9 = vld [vmem:[%s4310_s2 + $0x10] sm:$0xff]  ;;  %v21_v10 = vld [vmem:[%s4310_s2 + $0x18] sm:$0xff]  ;;  %v38_v11 = vld [vmem:[%s4310_s2 + $0xa0] sm:$0xff] }
   0x4   :  { %3318 = vmatprep.subr.bf16.mxu0 %v3317_v3  ;;  %v39_v12 = vld [vmem:[%s4310_s2 + $0xa8] sm:$0xff]  ;;  %v3323_v13 = vpack.c.bf16 %v21_v10, %v20_v9  ;;  %v22_v15 = vld [vmem:[%s4310_s2 + $0x20] sm:$0xff]  ;;  %v40_v17 = vld [vmem:[%s4310_s2 + $0xb0] sm:$0xff] }
   0x5   :  { %3320 = vmatpush3.bf16.msra.mxu0 %v3319_v7  ;;  %v3325_v14 = vpack.c.bf16 %v39_v12, %v38_v11  ;;  %v23_v16 = vld [vmem:[%s4310_s2 + $0x28] sm:$0xff]  ;;  %v41_v18 = vld [vmem:[%s4310_s2 + $0xb8] sm:$0xff]  ;;  %v24_v21 = vld [vmem:[%s4310_s2 + $0x30] sm:$0xff] }
   0x6   :  { %3322 = vmatprep.subr.bf16.mxu0 %v3321_v8  ;;  %v3327_v19 = vpack.c.bf16 %v23_v16, %v22_v15  ;;  %v3329_v20 = vpack.c.bf16 %v41_v18, %v40_v17  ;;  %v25_v22 = vld [vmem:[%s4310_s2 + $0x38] sm:$0xff]  ;;  %v42_v23 = vld [vmem:[%s4310_s2 + $0xc0] sm:$0xff]  ;;  %v43_v24 = vld [vmem:[%s4310_s2 + $0xc8] sm:$0xff]  ;;  %v154_v8 = vlaneseq }
   0x7   :  { %v15_v25 = vld [vmem:[%s4311_s0 + $0x8] sm:$0xff]  ;;  %v3331_v26 = vpack.c.bf16 %v25_v22, %v24_v21  ;;  %v3333_v27 = vpack.c.bf16 %v43_v24, %v42_v23  ;;  %v26_v28 = vld [vmem:[%s4310_s2 + $0x40] sm:$0xff]  ;;  %v44_v30 = vld [vmem:[%s4310_s2 + $0xd0] sm:$0xff] }
   0x8   :  { %114 = vmatprep.mubr.f32.mxu0 %v15_v25  ;;  %v27_v29 = vld [vmem:[%s4310_s2 + $0x48] sm:$0xff]  ;;  %v45_v31 = vld [vmem:[%s4310_s2 + $0xd8] sm:$0xff]  ;;  %v28_v34 = vld [vmem:[%s4310_s2 + $0x50] sm:$0xff]  ;;  %v3782_v12 = vshrl.u32 %v154_v8, 7 }
   0x9   :  { %3324 = vmatpush3.bf16.msra.mxu0 %v3323_v13  ;;  %v3335_v32 = vpack.c.bf16 %v27_v29, %v26_v28  ;;  %v3337_v33 = vpack.c.bf16 %v45_v31, %v44_v30  ;;  %v29_v35 = vld [vmem:[%s4310_s2 + $0x58] sm:$0xff]  ;;  %v46_v36 = vld [vmem:[%s4310_s2 + $0xe0] sm:$0xff]  ;;  %v47_v37 = vld [vmem:[%s4310_s2 + $0xe8] sm:$0xff] }
   0xa   :  { %3326 = vmatprep.subr.bf16.mxu0 %v3325_v14  ;;  %v3339_v38 = vpack.c.bf16 %v29_v35, %v28_v34  ;;  %v3341_v39 = vpack.c.bf16 %v47_v37, %v46_v36  ;;  %v30_v40 = vld [vmem:[%s4310_s2 + $0x60] sm:$0xff]  ;;  %v31_v41 = vld [vmem:[%s4310_s2 + $0x68] sm:$0xff]  ;;  %v48_v42 = vld [vmem:[%s4310_s2 + $0xf0] sm:$0xff]  ;;  %v3785_v14 = vsub.s32 0, %v3782_v12  ;;  %v3791_v16 = vsub.s32 1, %v3782_v12 }
   0xb   :  { %v49_v43 = vld [vmem:[%s4310_s2 + $0xf8] sm:$0xff]  ;;  %v3343_v44 = vpack.c.bf16 %v31_v41, %v30_v40  ;;  %v32_v46 = vld [vmem:[%s4310_s2 + $0x70] sm:$0xff]  ;;  %v14_v49 = vld [vmem:[%s4311_s0] sm:$0xff] }
   0xc   :  { %v3345_v45 = vpack.c.bf16 %v49_v43, %v48_v42  ;;  %v33_v47 = vld [vmem:[%s4310_s2 + $0x78] sm:$0xff]  ;;  %v16_v51 = vld [vmem:[%s4311_s0 + $0x10] sm:$0xff]  ;;  %v125_v15 = vld [vmem:[%s4310_s2 + $0x100] sm:$0x3] }
   0xd   :  { %3328 = vmatpush3.bf16.msra.mxu0 %v3327_v19  ;;  %v3347_v48 = vpack.c.bf16 %v33_v47, %v32_v46  ;;  %v17_v50 = vld [vmem:[%s4311_s0 + $0x18] sm:$0xff]  ;;  %v157_v17 = vrot.slane %v125_v15, %v3785_v14  ;;  %v209_v40 = vld [vmem:[%s4310_s2 + $0x148] sm:$0xff]  ;;  %v210_v41 = vld [vmem:[%s4310_s2 + $0x150] sm:$0xff] }
   0xe   :  { %3330 = vmatprep.subr.bf16.mxu0 %v3329_v20  ;;  %v163_v20 = vrot.slane %v125_v15, %v3791_v16  ;;  %v211_v43 = vld [vmem:[%s4310_s2 + $0x158] sm:$0xff]  ;;  %vm3857_vm1 = vmpackc.low %vm126_vm0, %vm126_vm0 }
  0x11   :  { %3332 = vmatpush3.bf16.msra.mxu0 %v3331_v26 }
  0x12   :  { %3334 = vmatprep.subr.bf16.mxu0 %v3333_v27 }
  0x15   :  { %3336 = vmatpush3.bf16.msra.mxu0 %v3335_v32 }
  0x16   :  { %3338 = vmatprep.subr.bf16.mxu0 %v3337_v33 }
  0x19   :  { %3340 = vmatpush3.bf16.msra.mxu0 %v3339_v38 }
  0x1a   :  { %3342 = vmatprep.subr.bf16.mxu0 %v3341_v39  ;;  %v208_v39 = vld [vmem:[%s4310_s2 + $0x140] sm:$0xff] }
  0x1b   :  { %v3349_v42 = vpack.c.bf16 %v209_v40, %v208_v39 }
  0x1d   :  { %3344 = vmatpush3.bf16.msra.mxu0 %v3343_v44  ;;  %v3353_v44 = vpack.c.bf16 %v211_v43, %v210_v41  ;;  %3350 = vmatprep.subr.bf16.mxu1 %v3349_v42 }
  0x1e   :  { %3346 = vmatprep.subr.bf16.mxu0 %v3345_v45  ;;  %3352 = vmatpush3.bf16.msra.mxu1 %v3349_v42 }
  0x1f   :  { %3354 = vmatprep.subr.bf16.mxu1 %v3353_v44 }
  0x21   :  { %3348 = vmatpush3.bf16.msra.mxu0 %v3347_v48 }
  0x22   :  { %3356 = vmatpush3.bf16.msra.mxu1 %v3353_v44 }
  0x24   :  { %115 = vmatmul.mubr.f32.vlgmr.msra.gmra.mrb[0].mxu0 %v14_v49 }
  0x25   :  { %119 = vmatprep.mubr.f32.mxu0 %v17_v50 }
  0x28   :  { %120 = vmatmul.mubr.f32.gmra.mrb[2].mxu0 %v16_v51  ;;  %v169_v51 = vld [vmem:[%s4310_s2 + $0x138] sm:$0x3] }
  0xf7   :  { %v2949_v52 = vpop.f32.mrb[0].mxu0 }
  0xf8   :  { %v2950_v53 = vpop.f32.mrb[1].mxu0 }
  0xf9   :  { %v2951_v54 = vadd.f32 %v2950_v53, %v2949_v52  ;;  %v199_v52 = vrot.slane %v169_v51, %v3785_v14 }
  0xfb   :  { %v2952_v55 = vpop.f32.mrb[2].mxu0  ;;  %v127_v56 = vsel %vm126_vm0, %v2951_v54, 0.0 }
  0xfc   :  { %v2953_v57 = vpop.f32.mrb[3].mxu0  ;;  %128 = vadd.xlane.f32.xlu0 %v127_v56 }
  0xfd   :  { %v2954_v58 = vadd.f32 %v2953_v57, %v2952_v55  ;;  %v205_v55 = vrot.slane %v169_v51, %v3791_v16 }
  0xff   :  { %v130_v59 = vsel %vm126_vm0, %v2954_v58, 0.0 }
 0x100   :  { %131 = vadd.xlane.f32.xlu0 %v130_v59 }
 0x189   :  { %v129_v60 = vpop.xlane.xlu0 %128 }
 0x18a   :  { %v134_v61 = vmul.f32 0.03125, %v129_v60 }
 0x18c   :  { %v136_v62 = vsub.f32 %v2951_v54, %v134_v61 }
 0x18d   :  { %v132_v63 = vpop.xlane.xlu0 %131 }
 0x18e   :  { %v135_v0 = vmul.f32 0.03125, %v132_v63  ;;  %v138_v1 = vmul.f32 %v136_v62, %v136_v62  ;;  %v3830_v63 = vld [vmem:[%s4310_s2 + $0x130] sm:$0xf] }
 0x190   :  { %v137_v2 = vsub.f32 %v2954_v58, %v135_v0  ;;  %v140_v3 = vsel %vm126_vm0, %v138_v1, 0.0  ;;  %v2839_v0 = vld [vmem:[%s4310_s2 + $0x160] ss:$0 sm:$0xff] }
 0x191   :  { %141 = vadd.xlane.f32.xlu1 %v140_v3 }
 0x192   :  { %v139_v4 = vmul.f32 %v137_v2, %v137_v2 }
 0x194   :  { %v143_v5 = vsel %vm126_vm0, %v139_v4, 0.0 }
 0x195   :  { %144 = vadd.xlane.f32.xlu1 %v143_v5 }
 0x21e   :  { %v142_v6 = vpop.xlane.xlu1 %141 }
 0x21f   :  { %v146_v7 = vmul.f32 0.03125, %v142_v6 }
 0x221   :  { %v148_v9 = vadd.f32 1e-05, %v146_v7 }
 0x222   :  { %v145_v10 = vpop.xlane.xlu1 %144 }
 0x223   :  { %3543 = vrsqrt.f32 %v148_v9  ;;  %v147_v11 = vmul.f32 0.03125, %v145_v10 }
 0x225   :  { %v149_v13 = vadd.f32 1e-05, %v147_v11 }
 0x227   :  { %3545 = vrsqrt.f32 %v149_v13 }
 0x22d   :  { %v3544_v18 = vpop.eup %3543 }
 0x22e   :  { %v152_v19 = vmul.f32 %v3544_v18, %v136_v62  ;;  %v703_v62 = vsub.s32 2, %v3782_v12 }
 0x230   :  { %v158_v21 = vmul.f32 %v157_v17, %v152_v19  ;;  %v3840_v3 = vrot.slane %v3830_v63, %v703_v62 }
 0x231   :  { %v3546_v22 = vpop.eup %3545 }
 0x232   :  { %v3795_v23 = vadd.f32 %v163_v20, %v158_v21  ;;  %v153_v24 = vmul.f32 %v3546_v22, %v137_v2  ;;  %v3837_v2 = vrot.slane %v3830_v63, %v3785_v14 }
 0x234   :  { %v170_v25 = vsel %vm126_vm0, %v3795_v23, 0.0  ;;  %v159_v26 = vmul.f32 %v157_v17, %v153_v24  ;;  %v3891_v24 = vld [vmem:[%s4312_s1 + $0x8] sm:$0xff] }
 0x235   :  { %171 = vadd.xlane.f32.xlu0 %v170_v25 }
 0x236   :  { %v3799_v27 = vadd.f32 %v163_v20, %v159_v26  ;;  %v3884_v20 = vld [vmem:[%s4312_s1] sm:$0xff] }
 0x238   :  { %v173_v28 = vsel %vm126_vm0, %v3799_v27, 0.0 }
 0x239   :  { %174 = vadd.xlane.f32.xlu1 %v173_v28 }
 0x2c2   :  { %v172_v29 = vpop.xlane.xlu0 %171 }
 0x2c3   :  { %v176_v30 = vmul.f32 0.03125, %v172_v29 }
 0x2c5   :  { %v178_v31 = vsub.f32 %v3795_v23, %v176_v30 }
 0x2c6   :  { %v175_v32 = vpop.xlane.xlu1 %174 }
 0x2c7   :  { %v177_v33 = vmul.f32 0.03125, %v175_v32  ;;  %v180_v34 = vmul.f32 %v178_v31, %v178_v31 }
 0x2c9   :  { %v179_v35 = vsub.f32 %v3799_v27, %v177_v33  ;;  %v182_v36 = vsel %vm126_vm0, %v180_v34, 0.0 }
 0x2ca   :  { %183 = vadd.xlane.f32.xlu0 %v182_v36 }
 0x2cb   :  { %v181_v37 = vmul.f32 %v179_v35, %v179_v35 }
 0x2cd   :  { %v185_v38 = vsel %vm126_vm0, %v181_v37, 0.0 }
 0x2ce   :  { %186 = vadd.xlane.f32.xlu1 %v185_v38 }
 0x357   :  { %v184_v45 = vpop.xlane.xlu0 %183 }
 0x358   :  { %v188_v46 = vmul.f32 0.03125, %v184_v45 }
 0x35a   :  { %v190_v47 = vadd.f32 1e-05, %v188_v46 }
 0x35b   :  { %v187_v48 = vpop.xlane.xlu1 %186 }
 0x35c   :  { %3547 = vrsqrt.f32 %v190_v47  ;;  %v189_v49 = vmul.f32 0.03125, %v187_v48 }
 0x35e   :  { %v191_v50 = vadd.f32 1e-05, %v189_v49  ;;  %v3908_v49 = vrot.slane %v3830_v63, %v3791_v16 }
 0x360   :  { %3549 = vrsqrt.f32 %v191_v50 }
 0x366   :  { %v3548_v53 = vpop.eup %3547 }
 0x367   :  { %v194_v54 = vmul.f32 %v3548_v53, %v178_v31 }
 0x369   :  { %v200_v56 = vmul.f32 %v199_v52, %v194_v54 }
 0x36a   :  { %v3550_v57 = vpop.eup %3549 }
 0x36b   :  { %v195_v58 = vmul.f32 %v3550_v57, %v179_v35  ;;  %v206_v59 = vadd.f32 %v205_v55, %v200_v56 }
 0x36d   :  { %v201_v60 = vmul.f32 %v199_v52, %v195_v58  ;;  %3091 = vmatprep.mubr.msk.f32.mxu1 %vm126_vm0, %v206_v59 }
 0x36f   :  { %v207_v61 = vadd.f32 %v205_v55, %v201_v60 }
 0x371   :  { %3092 = vmatmul.mubr.msk.f32.vlgmr.msra.gmra.mrb[0].mxu1 %vm126_vm0, %v207_v61 }
 0x444   :  { %v3093_v1 = vpop.f32.mrb[0].mxu1 }
 0x445   :  { %v3842_v4 = vadd.f32 %v3093_v1, %v2839_v0  ;;  %v289_v5 = vpop.f32.mrb[1].mxu1 }
 0x446   :  { %v3844_v6 = vadd.f32 %v2839_v0, %v289_v5 }
 0x447   :  { %v303_v18 = vmul.f32 %v3837_v2, %v3842_v4  ;;  %v706_v19 = vmul.f32 %v3840_v3, %v3842_v4  ;;  %v512_v54 = vmul.f32 %v3908_v49, %v3842_v4 }
 0x448   :  { %v3523_v7 = vpack.i.bf16 %v3842_v4, %v3844_v6  ;;  %v302_v8 = vmul.f32 %v3837_v2, %v3844_v6  ;;  %v705_v9 = vmul.f32 %v3840_v3, %v3844_v6  ;;  %v511_v53 = vmul.f32 %v3908_v49, %v3844_v6 }
 0x44a   :  { %3524 = vrot.lane.b32.xlu0 %v3523_v7, %s3645_s18  ;;  %3098 = vmatprep.mubr.msk.f32.mxu1 %vm126_vm0, %v302_v8 }
 0x44b   :  { %3126 = vmatprep.mubr.msk.f32.mxu0 %vm126_vm0, %v705_v9 }
 0x4bc   :  { %v3525_v10 = vpop.permute.xlu0 %3524 }
 0x4bd   :  { %v3527_v11 = vunpack.i.h.bf16 %v3525_v10  ;;  %v3526_v13 = vunpack.i.l.bf16 %v3525_v10 }
 0x4bf   :  { %v3861_v17 = vpack.c.bf16 %v3527_v11, %v3526_v13 }
 0x4c1   :  { %3359 = vmatprep.subr.msk.bf16.mxu1 %vm3857_vm1, %v3861_v17  ;;  %3379 = vmatprep.subr.msk.bf16.mxu0 %vm3857_vm1, %v3861_v17 }
 0x4c2   :  { %3362 = vmatpush3.bf16.xpose.msk.msra.mxu1 %vm3857_vm1, %v3861_v17  ;;  %3382 = vmatpush3.bf16.xpose.msk.msra.mxu0 %vm3857_vm1, %v3861_v17 }
 0x4c9   :  { %3099 = vmatmul.mubr.msk.f32.vlgmr.msra.gmra.mrb[2].mxu1 %vm126_vm0, %v303_v18  ;;  %3127 = vmatmul.mubr.msk.f32.vlgmr.msra.gmra.mrb[4].mxu0 %vm126_vm0, %v706_v19 }
 0x59c   :  { %v3100_v21 = vpop.f32.mrb[2].mxu1  ;;  %v3886_v22 = vpop.f32.mrb[4].mxu0 }
 0x59d   :  { %v386_v25 = vpop.f32.mrb[3].mxu1  ;;  %v779_v26 = vpop.f32.mrb[5].mxu0  ;;  %v392_v29 = vadd.f32 %v3100_v21, %v3891_v24  ;;  %v785_v1 = vadd.f32 %v3886_v22, %v3891_v24 }
 0x59e   :  { %v387_v28 = vadd.f32 %v386_v25, %v3884_v20  ;;  %v780_v62 = vadd.f32 %v779_v26, %v3884_v20 }
 0x59f   :  { %v399_v31 = vsel %vm395_vm2, %v392_v29, -inf }
 0x5a0   :  { %v396_v30 = vsel %vm395_vm2, %v387_v28, -inf  ;;  %v788_v5 = vsel %vm395_vm2, %v780_v62, -inf }
 0x5a1   :  { %397 = vmax.xlane.f32.xlu1 %v396_v30 }
 0x5a5   :  { %400 = vmax.xlane.f32.xlu1 %v399_v31 }
 0x62e   :  { %v398_v32 = vpop.xlane.xlu1 %397 }
 0x62f   :  { %v402_v33 = vsub.f32 %v387_v28, %v398_v32 }
 0x631   :  { %v404_v36 = vmul.f32 1.442695, %v402_v33 }
 0x632   :  { %v401_v34 = vpop.xlane.xlu1 %400 }
 0x633   :  { %v403_v35 = vsub.f32 %v392_v29, %v401_v34 }
 0x635   :  { %v406_v37 = vmul.f32 1.442695, %v403_v35 }
 0x637   :  { %3551 = vpow2.f32 %v406_v37 }
 0x638   :  { %3553 = vpow2.f32 %v404_v36 }
 0x641   :  { %v3552_v38 = vpop.eup %3551 }
 0x642   :  { %v411_v39 = vsel %vm395_vm2, %v3552_v38, 0.0  ;;  %v3554_v40 = vpop.eup %3553 }
 0x643   :  { %412 = vadd.xlane.f32.xlu1 %v411_v39  ;;  %v408_v41 = vsel %vm395_vm2, %v3554_v40, 0.0 }
 0x647   :  { %409 = vadd.xlane.f32.xlu1 %v408_v41 }
 0x658   :  { %3529 = vrot.lane.b32.xlu1 %v3523_v7, %s3646_s23  ;;  %v791_v7 = vsel %vm395_vm2, %v785_v1, -inf }
 0x6d0   :  { %v413_v42 = vpop.xlane.xlu1 %412 }
 0x6d1   :  { %3555 = vrcp.f32 %v413_v42 }
 0x6d4   :  { %v410_v43 = vpop.xlane.xlu1 %409 }
 0x6d5   :  { %3557 = vrcp.f32 %v410_v43 }
 0x6d8   :  { %v3530_v44 = vpop.permute.xlu1 %3529 }
 0x6d9   :  { %v3532_v45 = vunpack.i.h.bf16 %v3530_v44  ;;  %v3531_v46 = vunpack.i.l.bf16 %v3530_v44  ;;  %v897_v44 = vsub.s32 3, %v3782_v12 }
 0x6db   :  { %v3900_v47 = vpack.c.bf16 %v3532_v45, %v3531_v46  ;;  %v3556_v48 = vpop.eup %3555 }
 0x6dc   :  { %v417_v52 = vmul.f32 %v3556_v48, %v3552_v38  ;;  %v3949_v48 = vrot.slane %v3830_v63, %v897_v44 }
 0x6dd   :  { %3364 = vmatprep.subr.bf16.mxu1 %v3900_v47  ;;  %3394 = vmatprep.subr.bf16.mxu0 %v3900_v47 }
 0x6de   :  { %3366 = vmatpush3.bf16.msra.mxu1 %v3900_v47  ;;  %3396 = vmatpush3.bf16.msra.mxu0 %v3900_v47  ;;  %v899_v12 = vmul.f32 %v3949_v48, %v3844_v6  ;;  %v900_v63 = vmul.f32 %v3949_v48, %v3842_v4 }
 0x6df   :  { %v3558_v50 = vpop.eup %3557  ;;  %3369 = vmatprep.subr.msk.bf16.mxu1 %vm3857_vm1, %v3861_v17 }
 0x6e0   :  { %v416_v51 = vmul.f32 %v3558_v50, %v3554_v40 }
 0x6e2   :  { %3105 = vmatprep.mubr.msk.f32.mxu1 %vm395_vm2, %v416_v51 }
 0x6e3   :  { %3106 = vmatmul.mubr.msk.f32.vlgmr.msra.gmra.mrb[4].mxu1 %vm395_vm2, %v417_v52 }
 0x6e4   :  { %3112 = vmatprep.mubr.msk.f32.mxu1 %vm126_vm0, %v511_v53 }
 0x6e7   :  { %3372 = vmatpush3.bf16.xpose.msk.msra.mxu1 %vm3857_vm1, %v3861_v17 }
 0x6e8   :  { %3374 = vmatprep.subr.bf16.mxu1 %v3900_v47 }
 0x6ee   :  { %3113 = vmatmul.mubr.msk.f32.vlgmr.msra.gmra.mrb[6].mxu1 %vm126_vm0, %v512_v54 }
 0x6ef   :  { %3376 = vmatpush3.bf16.msra.mxu1 %v3900_v47 }
 0x6f0   :  { %3384 = vmatprep.subr.bf16.mxu1 %v3900_v47 }
 0x7b6   :  { %v3927_v55 = vpop.f32.mrb[4].mxu1 }
 0x7b7   :  { %v3929_v56 = vpop.f32.mrb[5].mxu1  ;;  %v506_v53 = vmul.f32 %v3927_v55, %v3837_v2 }
 0x7c1   :  { %v3114_v57 = vpop.f32.mrb[6].mxu1 }
 0x7c2   :  { %v591_v58 = vadd.f32 %v3114_v57, %v3891_v24  ;;  %v585_v59 = vpop.f32.mrb[7].mxu1  ;;  %v505_v57 = vmul.f32 %v3929_v56, %v3837_v2 }
 0x7c3   :  { %v586_v60 = vadd.f32 %v585_v59, %v3884_v20 }
 0x7c4   :  { %v597_v61 = vsel %vm395_vm2, %v591_v58, -inf }
 0x7c5   :  { %598 = vmax.xlane.f32.xlu1 %v597_v61  ;;  %v594_v0 = vsel %vm395_vm2, %v586_v60, -inf }
 0x7c6   :  { %595 = vmax.xlane.f32.xlu0 %v594_v0 }
 0x7ca   :  { %789 = vmax.xlane.f32.xlu0 %v788_v5 }
 0x7ce   :  { %792 = vmax.xlane.f32.xlu0 %v791_v7 }
 0x852   :  { %v599_v8 = vpop.xlane.xlu1 %598 }
 0x853   :  { %v601_v9 = vsub.f32 %v591_v58, %v599_v8  ;;  %v596_v10 = vpop.xlane.xlu0 %595 }
 0x854   :  { %v600_v11 = vsub.f32 %v586_v60, %v596_v10 }
 0x855   :  { %v604_v13 = vmul.f32 1.442695, %v601_v9 }
 0x856   :  { %v602_v18 = vmul.f32 1.442695, %v600_v11 }
 0x857   :  { %v790_v19 = vpop.xlane.xlu0 %789 }
 0x858   :  { %3559 = vpow2.f32 %v602_v18  ;;  %v794_v21 = vsub.f32 %v780_v62, %v790_v19 }
 0x859   :  { %3561 = vpow2.f32 %v604_v13 }
 0x85a   :  { %v796_v25 = vmul.f32 1.442695, %v794_v21 }
 0x85b   :  { %v793_v26 = vpop.xlane.xlu0 %792 }
 0x85c   :  { %v795_v28 = vsub.f32 %v785_v1, %v793_v26  ;;  %3563 = vpow2.f32 %v796_v25 }
 0x85e   :  { %v798_v22 = vmul.f32 1.442695, %v795_v28 }
 0x860   :  { %3565 = vpow2.f32 %v798_v22 }
 0x862   :  { %v3560_v29 = vpop.eup %3559 }
 0x863   :  { %v606_v30 = vsel %vm395_vm2, %v3560_v29, 0.0  ;;  %v3562_v31 = vpop.eup %3561 }
 0x864   :  { %607 = vadd.xlane.f32.xlu0 %v606_v30  ;;  %v609_v32 = vsel %vm395_vm2, %v3562_v31, 0.0  ;;  %v1090_v30 = vld [vmem:[%s4310_s2 + $0x170] sm:$0xff] }
 0x866   :  { %v3564_v33 = vpop.eup %3563 }
 0x867   :  { %v800_v35 = vsel %vm395_vm2, %v3564_v33, 0.0 }
 0x868   :  { %610 = vadd.xlane.f32.xlu0 %v609_v32 }
 0x86a   :  { %v3566_v34 = vpop.eup %3565 }
 0x86b   :  { %v803_v36 = vsel %vm395_vm2, %v3566_v34, 0.0 }
 0x86c   :  { %801 = vadd.xlane.f32.xlu0 %v800_v35  ;;  %804 = vadd.xlane.f32.xlu1 %v803_v36 }
 0x8f1   :  { %v608_v37 = vpop.xlane.xlu0 %607 }
 0x8f2   :  { %3567 = vrcp.f32 %v608_v37 }
 0x8f5   :  { %v611_v38 = vpop.xlane.xlu0 %610 }
 0x8f6   :  { %3569 = vrcp.f32 %v611_v38  ;;  %v1091_v38 = vld [vmem:[%s4310_s2 + $0x178] sm:$0xff] }
 0x8f9   :  { %v805_v39 = vpop.xlane.xlu1 %804  ;;  %v802_v40 = vpop.xlane.xlu0 %801 }
 0x8fa   :  { %3571 = vrcp.f32 %v805_v39  ;;  %v1092_v39 = vld [vmem:[%s4310_s2 + $0x180] sm:$0xff] }
 0x8fb   :  { %3573 = vrcp.f32 %v802_v40  ;;  %v3401_v40 = vpack.c.bf16 %v1092_v39, %v1091_v38  ;;  %v1329_v38 = vld [vmem:[%s4310_s2 + $0x1d8] sm:$0xff] }
 0x8fc   :  { %v3568_v41 = vpop.eup %3567 }
 0x8fd   :  { %v614_v42 = vmul.f32 %v3568_v41, %v3560_v29  ;;  %v1089_v29 = vld [vmem:[%s4310_s2 + $0x168] sm:$0xff] }
 0x8ff   :  { %3119 = vmatprep.mubr.msk.f32.mxu1 %vm395_vm2, %v614_v42 }
 0x900   :  { %v3570_v43 = vpop.eup %3569 }
 0x901   :  { %v615_v45 = vmul.f32 %v3570_v43, %v3562_v31  ;;  %v3397_v31 = vpack.c.bf16 %v1090_v30, %v1089_v29 }
 0x903   :  { %3120 = vmatmul.mubr.msk.f32.vlgmr.msra.gmra.mrb[8].mxu1 %vm395_vm2, %v615_v45  ;;  %3398 = vmatprep.subr.bf16.mxu0 %v3397_v31 }
 0x904   :  { %v3572_v46 = vpop.eup %3571  ;;  %3386 = vmatpush3.bf16.msra.mxu1 %v3900_v47 }
 0x905   :  { %v3574_v50 = vpop.eup %3573  ;;  %v809_v51 = vmul.f32 %v3572_v46, %v3566_v34  ;;  %3389 = vmatprep.subr.msk.bf16.mxu1 %vm3857_vm1, %v3861_v17 }
 0x906   :  { %v808_v52 = vmul.f32 %v3574_v50, %v3564_v33  ;;  %v2866_v50 = vld [vmem:[%s4310_s2 + $0x188] ss:$0 sm:$0xff] }
 0x908   :  { %3133 = vmatprep.mubr.msk.f32.mxu1 %vm395_vm2, %v808_v52 }
 0x909   :  { %3134 = vmatmul.mubr.msk.f32.vlgmr.msra.gmra.mrb[10].mxu1 %vm395_vm2, %v809_v51 }
 0x90a   :  { %3140 = vmatprep.mubr.msk.f32.mxu1 %vm126_vm0, %v899_v12 }
 0x90d   :  { %3392 = vmatpush3.bf16.xpose.msk.msra.mxu1 %vm3857_vm1, %v3861_v17 }
 0x914   :  { %3141 = vmatmul.mubr.msk.f32.vlgmr.msra.gmra.mrb[12].mxu1 %vm126_vm0, %v900_v63 }
 0x9d6   :  { %v3121_v47 = vpop.f32.mrb[8].mxu1 }
 0x9d7   :  { %v698_v54 = vmul.f32 %v3121_v47, %v3908_v49  ;;  %v688_v6 = vpop.f32.mrb[9].mxu1 }
 0x9d8   :  { %v697_v58 = vmul.f32 %v688_v6, %v3908_v49 }
 0x9d9   :  { %v700_v59 = vadd.f32 %v698_v54, %v506_v53 }
 0x9da   :  { %v699_v60 = vadd.f32 %v697_v58, %v505_v57 }
 0x9dc   :  { %v3135_v17 = vpop.f32.mrb[10].mxu1 }
 0x9dd   :  { %v892_v61 = vmul.f32 %v3135_v17, %v3840_v3  ;;  %v882_v4 = vpop.f32.mrb[11].mxu1 }
 0x9de   :  { %v891_v62 = vmul.f32 %v882_v4, %v3840_v3 }
 0x9df   :  { %v894_v0 = vadd.f32 %v892_v61, %v700_v59 }
 0x9e0   :  { %v893_v1 = vadd.f32 %v891_v62, %v699_v60 }
 0x9e7   :  { %v3142_v5 = vpop.f32.mrb[12].mxu1 }
 0x9e8   :  { %v979_v55 = vadd.f32 %v3142_v5, %v3891_v24  ;;  %v973_v7 = vpop.f32.mrb[13].mxu1 }
 0x9e9   :  { %v974_v8 = vadd.f32 %v973_v7, %v3884_v20  ;;  %v1223_v7 = vld [vmem:[%s4310_s2 + $0x1b0] sm:$0xff] }
 0x9ea   :  { %v985_v56 = vsel %vm395_vm2, %v979_v55, -inf }
 0x9eb   :  { %986 = vmax.xlane.f32.xlu1 %v985_v56  ;;  %v982_v9 = vsel %vm395_vm2, %v974_v8, -inf }
 0x9ec   :  { %983 = vmax.xlane.f32.xlu0 %v982_v9 }
 0xa78   :  { %v987_v10 = vpop.xlane.xlu1 %986 }
 0xa79   :  { %v989_v11 = vsub.f32 %v979_v55, %v987_v10  ;;  %v984_v13 = vpop.xlane.xlu0 %983  ;;  %v1222_v55 = vld [vmem:[%s4310_s2 + $0x1a8] sm:$0xff] }
 0xa7a   :  { %v988_v18 = vsub.f32 %v974_v8, %v984_v13  ;;  %v3409_v8 = vpack.c.bf16 %v1223_v7, %v1222_v55 }
 0xa7b   :  { %v992_v19 = vmul.f32 1.442695, %v989_v11 }
 0xa7c   :  { %v990_v21 = vmul.f32 1.442695, %v988_v18 }
 0xa7d   :  { %3575 = vpow2.f32 %v992_v19  ;;  %v1181_v19 = vld [vmem:[%s4310_s2 + $0x190] sm:$0x3] }
 0xa7e   :  { %3577 = vpow2.f32 %v990_v21  ;;  %v1211_v21 = vrot.slane %v1181_v19, %v3785_v14  ;;  %v1217_v29 = vrot.slane %v1181_v19, %v3791_v16 }
 0xa87   :  { %v3576_v25 = vpop.eup %3575 }
 0xa88   :  { %v3578_v26 = vpop.eup %3577  ;;  %v997_v28 = vsel %vm395_vm2, %v3576_v25, 0.0 }
 0xa89   :  { %998 = vadd.xlane.f32.xlu1 %v997_v28  ;;  %v994_v22 = vsel %vm395_vm2, %v3578_v26, 0.0 }
 0xa8a   :  { %995 = vadd.xlane.f32.xlu0 %v994_v22 }
 0xb16   :  { %v999_v32 = vpop.xlane.xlu1 %998 }
 0xb17   :  { %3579 = vrcp.f32 %v999_v32  ;;  %v996_v33 = vpop.xlane.xlu0 %995 }
 0xb18   :  { %3581 = vrcp.f32 %v996_v33 }
 0xb21   :  { %v3580_v34 = vpop.eup %3579 }
 0xb22   :  { %v3582_v35 = vpop.eup %3581  ;;  %v1003_v37 = vmul.f32 %v3580_v34, %v3576_v25  ;;  %v1326_v34 = vld [vmem:[%s4310_s2 + $0x1c0] sm:$0xff] }
 0xb23   :  { %v1002_v36 = vmul.f32 %v3582_v35, %v3578_v26  ;;  %v1327_v35 = vld [vmem:[%s4310_s2 + $0x1c8] sm:$0xff] }
 0xb25   :  { %3147 = vmatprep.mubr.msk.f32.mxu0 %vm395_vm2, %v1002_v36  ;;  %v3413_v36 = vpack.c.bf16 %v1327_v35, %v1326_v34 }
 0xb26   :  { %3148 = vmatmul.mubr.msk.f32.vlgmr.msra.gmra.mrb[6].mxu0 %vm395_vm2, %v1003_v37  ;;  %v1328_v37 = vld [vmem:[%s4310_s2 + $0x1d0] sm:$0xff] }
 0xb27   :  { %3400 = vmatpush3.bf16.msra.mxu0 %v3397_v31  ;;  %v3417_v39 = vpack.c.bf16 %v1329_v38, %v1328_v37 }
 0xb28   :  { %3402 = vmatprep.subr.bf16.mxu0 %v3401_v40 }
 0xb2b   :  { %3404 = vmatpush3.bf16.msra.mxu0 %v3401_v40  ;;  %v1330_v40 = vld [vmem:[%s4310_s2 + $0x1e0] sm:$0xff] }
 0xb2c   :  { %3414 = vmatprep.subr.bf16.mxu0 %v3413_v36 }
 0xbf9   :  { %v3149_v41 = vpop.f32.mrb[6].mxu0 }
 0xbfa   :  { %v1086_v42 = vmul.f32 %v3149_v41, %v3949_v48  ;;  %v1076_v43 = vpop.f32.mrb[7].mxu0  ;;  %v1331_v41 = vld [vmem:[%s4310_s2 + $0x1e8] sm:$0xff] }
 0xbfb   :  { %v1085_v44 = vmul.f32 %v1076_v43, %v3949_v48  ;;  %v1332_v43 = vld [vmem:[%s4310_s2 + $0x1f0] sm:$0xff] }
 0xbfc   :  { %v1088_v45 = vadd.f32 %v1086_v42, %v894_v0  ;;  %v1220_v0 = vld [vmem:[%s4310_s2 + $0x198] sm:$0xff]  ;;  %v3421_v42 = vpack.c.bf16 %v1331_v41, %v1330_v40 }
 0xbfd   :  { %v1087_v46 = vadd.f32 %v1085_v44, %v893_v1  ;;  %v1221_v1 = vld [vmem:[%s4310_s2 + $0x1a0] sm:$0xff]  ;;  %v1333_v44 = vld [vmem:[%s4310_s2 + $0x1f8] sm:$0xff] }
 0xbfe   :  { %v3405_v5 = vpack.c.bf16 %v1221_v1, %v1220_v0 }
 0xbff   :  { %3158 = vmatprep.mubr.msk.f32.mxu0 %vm126_vm0, %v1087_v46  ;;  %v2869_v46 = vld [vmem:[%s4310_s2 + $0x1b8] ss:$0 sm:$0xff] }
 0xc00   :  { %3159 = vmatmul.mubr.msk.f32.vlgmr.msra.gmra.mrb[8].mxu0 %vm126_vm0, %v1088_v45  ;;  %3406 = vmatprep.subr.bf16.mxu1 %v3405_v5  ;;  %v3425_v45 = vpack.c.bf16 %v1333_v44, %v1332_v43 }
 0xc01   :  { %3408 = vmatpush3.bf16.msra.mxu1 %v3405_v5  ;;  %3416 = vmatpush3.bf16.msra.mxu0 %v3413_v36 }
 0xc02   :  { %3410 = vmatprep.subr.bf16.mxu1 %v3409_v8  ;;  %3418 = vmatprep.subr.bf16.mxu0 %v3417_v39 }
 0xc05   :  { %3412 = vmatpush3.bf16.msra.mxu1 %v3409_v8  ;;  %3420 = vmatpush3.bf16.msra.mxu0 %v3417_v39  ;;  %v1423_v39 = vld [vmem:[%s4310_s2 + $0x208] sm:$0x3] }
 0xc06   :  { %3422 = vmatprep.subr.bf16.mxu0 %v3421_v42  ;;  %v1453_v40 = vrot.slane %v1423_v39, %v3785_v14 }
 0xc09   :  { %3424 = vmatpush3.bf16.msra.mxu0 %v3421_v42 }
 0xc0a   :  { %3426 = vmatprep.subr.bf16.mxu0 %v3425_v45 }
 0xc0d   :  { %3428 = vmatpush3.bf16.msra.mxu0 %v3425_v45  ;;  %v1459_v45 = vrot.slane %v1423_v39, %v3791_v16 }
 0xcd3   :  { %v3160_v51 = vpop.f32.mrb[8].mxu0 }
 0xcd4   :  { %v1176_v52 = vadd.f32 %v3160_v51, %v2866_v50  ;;  %v1170_v12 = vpop.f32.mrb[9].mxu0 }
 0xcd5   :  { %v1171_v63 = vadd.f32 %v2866_v50, %v1170_v12 }
 0xcd6   :  { %v4001_v47 = vadd.f32 %v1176_v52, %v3799_v27 }
 0xcd7   :  { %v4004_v53 = vadd.f32 %v1171_v63, %v3795_v23 }
 0xcd8   :  { %v1185_v54 = vsel %vm126_vm0, %v4001_v47, 0.0 }
 0xcd9   :  { %1186 = vadd.xlane.f32.xlu1 %v1185_v54  ;;  %v1182_v6 = vsel %vm126_vm0, %v4004_v53, 0.0 }
 0xcda   :  { %1183 = vadd.xlane.f32.xlu0 %v1182_v6 }
 0xd66   :  { %v1187_v57 = vpop.xlane.xlu1 %1186 }
 0xd67   :  { %v1189_v58 = vmul.f32 0.03125, %v1187_v57  ;;  %v1184_v59 = vpop.xlane.xlu0 %1183 }
 0xd68   :  { %v1188_v60 = vmul.f32 0.03125, %v1184_v59 }
 0xd69   :  { %v1191_v17 = vsub.f32 %v4001_v47, %v1189_v58 }
 0xd6a   :  { %v1190_v27 = vsub.f32 %v4004_v53, %v1188_v60 }
 0xd6b   :  { %v1193_v61 = vmul.f32 %v1191_v17, %v1191_v17 }
 0xd6c   :  { %v1192_v4 = vmul.f32 %v1190_v27, %v1190_v27 }
 0xd6d   :  { %v1197_v23 = vsel %vm126_vm0, %v1193_v61, 0.0 }
 0xd6e   :  { %1198 = vadd.xlane.f32.xlu1 %v1197_v23  ;;  %v1194_v62 = vsel %vm126_vm0, %v1192_v4, 0.0 }
 0xd6f   :  { %1195 = vadd.xlane.f32.xlu0 %v1194_v62  ;;  %v2874_v62 = vld [vmem:[%s4310_s2 + $0x200] ss:$0 sm:$0xff] }
 0xdfb   :  { %v1199_v56 = vpop.xlane.xlu1 %1198 }
 0xdfc   :  { %v1201_v9 = vmul.f32 0.03125, %v1199_v56  ;;  %v1196_v10 = vpop.xlane.xlu0 %1195 }
 0xdfd   :  { %v1200_v11 = vmul.f32 0.03125, %v1196_v10 }
 0xdfe   :  { %v1203_v13 = vadd.f32 1e-05, %v1201_v9 }
 0xdff   :  { %v1202_v18 = vadd.f32 1e-05, %v1200_v11 }
 0xe00   :  { %3583 = vrsqrt.f32 %v1203_v13 }
 0xe01   :  { %3585 = vrsqrt.f32 %v1202_v18 }
 0xe0a   :  { %v3584_v25 = vpop.eup %3583 }
 0xe0b   :  { %v3586_v26 = vpop.eup %3585  ;;  %v1207_v28 = vmul.f32 %v3584_v25, %v1191_v17 }
 0xe0c   :  { %v1206_v22 = vmul.f32 %v3586_v26, %v1190_v27 }
 0xe0d   :  { %v1213_v30 = vmul.f32 %v1211_v21, %v1207_v28  ;;  %v1462_v28 = vld [vmem:[%s4310_s2 + $0x210] sm:$0xff] }
 0xe0e   :  { %v1212_v31 = vmul.f32 %v1211_v21, %v1206_v22  ;;  %v1463_v22 = vld [vmem:[%s4310_s2 + $0x218] sm:$0xff] }
 0xe0f   :  { %v1219_v33 = vadd.f32 %v1217_v29, %v1213_v30  ;;  %v1464_v30 = vld [vmem:[%s4310_s2 + $0x220] sm:$0xff] }
 0xe10   :  { %v1218_v32 = vadd.f32 %v1217_v29, %v1212_v31  ;;  %v3429_v29 = vpack.c.bf16 %v1463_v22, %v1462_v28  ;;  %v1465_v31 = vld [vmem:[%s4310_s2 + $0x228] sm:$0xff] }
 0xe12   :  { %3169 = vmatprep.mubr.msk.f32.mxu1 %vm126_vm0, %v1218_v32  ;;  %3430 = vmatprep.subr.bf16.mxu1 %v3429_v29  ;;  %v3433_v32 = vpack.c.bf16 %v1465_v31, %v1464_v30 }
 0xe13   :  { %3170 = vmatmul.mubr.msk.f32.vlgmr.msra.gmra.mrb[14].mxu1 %vm126_vm0, %v1219_v33 }
 0xe14   :  { %3432 = vmatpush3.bf16.msra.mxu1 %v3429_v29 }
 0xe15   :  { %3434 = vmatprep.subr.bf16.mxu1 %v3433_v32 }
 0xe18   :  { %3436 = vmatpush3.bf16.msra.mxu1 %v3433_v32 }
 0xee6   :  { %v3171_v50 = vpop.f32.mrb[14].mxu1 }
 0xee7   :  { %v1307_v51 = vadd.f32 %v3171_v50, %v2869_v46  ;;  %v1301_v52 = vpop.f32.mrb[15].mxu1 }
 0xee8   :  { %v1302_v12 = vadd.f32 %v2869_v46, %v1301_v52 }
 0xee9   :  { %v2873_v63 = vmul.f32 -1.702, %v1307_v51 }
 0xeea   :  { %v2872_v54 = vmul.f32 -1.702, %v1302_v12 }
 0xeeb   :  { %v1316_v6 = vmul.f32 1.442695, %v2873_v63 }
 0xeec   :  { %v1314_v57 = vmul.f32 1.442695, %v2872_v54 }
 0xeed   :  { %3587 = vpow2.f32 %v1316_v6 }
 0xeee   :  { %3589 = vpow2.f32 %v1314_v57 }
 0xef7   :  { %v3588_v58 = vpop.eup %3587 }
 0xef8   :  { %v3590_v59 = vpop.eup %3589  ;;  %v1319_v60 = vadd.f32 1.0, %v3588_v58 }
 0xef9   :  { %v1318_v17 = vadd.f32 1.0, %v3590_v59 }
 0xefa   :  { %3591 = vrcp.f32 %v1319_v60 }
 0xefb   :  { %3593 = vrcp.f32 %v1318_v17 }
 0xf04   :  { %v3592_v27 = vpop.eup %3591 }
 0xf05   :  { %v3594_v61 = vpop.eup %3593  ;;  %v1325_v23 = vmul.f32 %v3592_v27, %v1307_v51 }
 0xf06   :  { %v1324_v4 = vmul.f32 %v3594_v61, %v1302_v12  ;;  %v2877_v12 = vld [vmem:[%s4310_s2 + $0x230] ss:$0 sm:$0xff] }
 0xf08   :  { %3188 = vmatprep.mubr.msk.f32.mxu0 %vm1339_vm3, %v1324_v4 }
 0xf09   :  { %3189 = vmatmul.mubr.msk.f32.vlgmr.msra.gmra.mrb[10].mxu0 %vm1339_vm3, %v1325_v23 }
 0xfdc   :  { %v3190_v0 = vpop.f32.mrb[10].mxu0 }
 0xfdd   :  { %v1418_v1 = vadd.f32 %v3190_v0, %v2874_v62  ;;  %v1412_v5 = vpop.f32.mrb[11].mxu0 }
 0xfde   :  { %v1413_v55 = vadd.f32 %v2874_v62, %v1412_v5 }
 0xfdf   :  { %v4066_v7 = vadd.f32 %v1418_v1, %v4001_v47 }
 0xfe0   :  { %v4069_v8 = vadd.f32 %v1413_v55, %v4004_v53 }
 0xfe1   :  { %v1427_v56 = vsel %vm126_vm0, %v4066_v7, 0.0 }
 0xfe2   :  { %1428 = vadd.xlane.f32.xlu1 %v1427_v56  ;;  %v1424_v9 = vsel %vm126_vm0, %v4069_v8, 0.0 }
 0xfe3   :  { %1425 = vadd.xlane.f32.xlu0 %v1424_v9 }
0x106f   :  { %v1429_v10 = vpop.xlane.xlu1 %1428 }
0x1070   :  { %v1431_v11 = vmul.f32 0.03125, %v1429_v10  ;;  %v1426_v13 = vpop.xlane.xlu0 %1425 }
0x1071   :  { %v1430_v18 = vmul.f32 0.03125, %v1426_v13 }
0x1072   :  { %v1433_v19 = vsub.f32 %v4066_v7, %v1431_v11 }
0x1073   :  { %v1432_v47 = vsub.f32 %v4069_v8, %v1430_v18 }
0x1074   :  { %v1435_v21 = vmul.f32 %v1433_v19, %v1433_v19 }
0x1075   :  { %v1434_v25 = vmul.f32 %v1432_v47, %v1432_v47 }
0x1076   :  { %v1439_v53 = vsel %vm126_vm0, %v1435_v21, 0.0 }
0x1077   :  { %1440 = vadd.xlane.f32.xlu1 %v1439_v53  ;;  %v1436_v26 = vsel %vm126_vm0, %v1434_v25, 0.0 }
0x1078   :  { %1437 = vadd.xlane.f32.xlu0 %v1436_v26 }
0x1104   :  { %v1441_v33 = vpop.xlane.xlu1 %1440 }
0x1105   :  { %v1443_v34 = vmul.f32 0.03125, %v1441_v33  ;;  %v1438_v35 = vpop.xlane.xlu0 %1437 }
0x1106   :  { %v1442_v36 = vmul.f32 0.03125, %v1438_v35 }
0x1107   :  { %v1445_v37 = vadd.f32 1e-05, %v1443_v34 }
0x1108   :  { %v1444_v38 = vadd.f32 1e-05, %v1442_v36 }
0x1109   :  { %3595 = vrsqrt.f32 %v1445_v37 }
0x110a   :  { %3597 = vrsqrt.f32 %v1444_v38 }
0x1113   :  { %v3596_v41 = vpop.eup %3595 }
0x1114   :  { %v3598_v42 = vpop.eup %3597  ;;  %v1449_v43 = vmul.f32 %v3596_v41, %v1433_v19 }
0x1115   :  { %v1448_v44 = vmul.f32 %v3598_v42, %v1432_v47 }
0x1116   :  { %v1455_v46 = vmul.f32 %v1453_v40, %v1449_v43 }
0x1117   :  { %v1454_v50 = vmul.f32 %v1453_v40, %v1448_v44 }
0x1118   :  { %v1461_v52 = vadd.f32 %v1459_v45, %v1455_v46 }
0x1119   :  { %v1460_v51 = vadd.f32 %v1459_v45, %v1454_v50 }
0x111b   :  { %3199 = vmatprep.mubr.msk.f32.mxu1 %vm126_vm0, %v1460_v51 }
0x111c   :  { %3200 = vmatmul.mubr.msk.f32.vlgmr.msra.gmra.mrb[16].mxu1 %vm126_vm0, %v1461_v52 }
0x11ef   :  { %v3201_v63 = vpop.f32.mrb[16].mxu1 }
0x11f0   :  { %v4101_v54 = vadd.f32 %v3201_v63, %v2877_v12  ;;  %v1543_v6 = vpop.f32.mrb[17].mxu1 }
0x11f1   :  { %v4103_v57 = vadd.f32 %v2877_v12, %v1543_v6 }
0x11f2   :  { %v1553_v4 = vmul.f32 %v4101_v54, %v3837_v2  ;;  %v1757_v62 = vmul.f32 %v4101_v54, %v3908_v49 }
0x11f3   :  { %v3533_v58 = vpack.i.bf16 %v4101_v54, %v4103_v57  ;;  %v1552_v59 = vmul.f32 %v4103_v57, %v3837_v2  ;;  %v1756_v23 = vmul.f32 %v4103_v57, %v3908_v49 }
0x11f5   :  { %3534 = vrot.lane.b32.xlu0 %v3533_v58, %s3645_s18  ;;  %3206 = vmatprep.mubr.msk.f32.mxu1 %vm126_vm0, %v1552_v59 }
0x1267   :  { %v3535_v60 = vpop.permute.xlu0 %3534 }
0x1268   :  { %v3537_v17 = vunpack.i.h.bf16 %v3535_v60  ;;  %v3536_v27 = vunpack.i.l.bf16 %v3535_v60 }
0x126a   :  { %v4111_v61 = vpack.c.bf16 %v3537_v17, %v3536_v27 }
0x126c   :  { %3439 = vmatprep.subr.msk.bf16.mxu1 %vm3857_vm1, %v4111_v61 }
0x126d   :  { %3442 = vmatpush3.bf16.xpose.msk.msra.mxu1 %vm3857_vm1, %v4111_v61 }
0x126e   :  { %3449 = vmatprep.subr.msk.bf16.mxu1 %vm3857_vm1, %v4111_v61 }
0x1274   :  { %3207 = vmatmul.mubr.msk.f32.vlgmr.msra.gmra.mrb[18].mxu1 %vm126_vm0, %v1553_v4 }
0x1275   :  { %3452 = vmatpush3.bf16.xpose.msk.msra.mxu1 %vm3857_vm1, %v4111_v61  ;;  %3220 = vmatprep.mubr.msk.f32.mxu1 %vm126_vm0, %v1756_v23  ;;  %v1946_v23 = vmul.f32 %v4103_v57, %v3840_v3 }
0x127c   :  { %3221 = vmatmul.mubr.msk.f32.vlgmr.msra.gmra.mrb[20].mxu1 %vm126_vm0, %v1757_v62  ;;  %v1947_v62 = vmul.f32 %v4101_v54, %v3840_v3 }
0x1347   :  { %v3208_v0 = vpop.f32.mrb[18].mxu1 }
0x1348   :  { %v1636_v1 = vpop.f32.mrb[19].mxu1  ;;  %v1642_v55 = vadd.f32 %v3208_v0, %v3891_v24 }
0x1349   :  { %v1637_v5 = vadd.f32 %v1636_v1, %v3884_v20 }
0x134a   :  { %v1648_v10 = vsel %vm395_vm2, %v1642_v55, -inf }
0x134b   :  { %v1645_v56 = vsel %vm395_vm2, %v1637_v5, -inf }
0x134c   :  { %1646 = vmax.xlane.f32.xlu1 %v1645_v56 }
0x134f   :  { %v3222_v9 = vpop.f32.mrb[20].mxu1 }
0x1350   :  { %v1830_v11 = vpop.f32.mrb[21].mxu1  ;;  %1649 = vmax.xlane.f32.xlu1 %v1648_v10  ;;  %v1836_v18 = vadd.f32 %v3222_v9, %v3891_v24 }
0x1351   :  { %v1831_v13 = vadd.f32 %v1830_v11, %v3884_v20 }
0x1352   :  { %v1842_v47 = vsel %vm395_vm2, %v1836_v18, -inf }
0x1353   :  { %v1839_v19 = vsel %vm395_vm2, %v1831_v13, -inf }
0x1354   :  { %1840 = vmax.xlane.f32.xlu1 %v1839_v19 }
0x1358   :  { %1843 = vmax.xlane.f32.xlu1 %v1842_v47 }
0x13d9   :  { %v1647_v21 = vpop.xlane.xlu1 %1646 }
0x13da   :  { %v1651_v25 = vsub.f32 %v1637_v5, %v1647_v21 }
0x13dc   :  { %v1653_v28 = vmul.f32 1.442695, %v1651_v25 }
0x13dd   :  { %v1650_v53 = vpop.xlane.xlu1 %1649 }
0x13de   :  { %v1652_v26 = vsub.f32 %v1642_v55, %v1650_v53 }
0x13e0   :  { %v1655_v22 = vmul.f32 1.442695, %v1652_v26 }
0x13e1   :  { %v1841_v29 = vpop.xlane.xlu1 %1840 }
0x13e2   :  { %3599 = vpow2.f32 %v1655_v22  ;;  %v1845_v30 = vsub.f32 %v1831_v13, %v1841_v29 }
0x13e3   :  { %3601 = vpow2.f32 %v1653_v28 }
0x13e4   :  { %v1847_v31 = vmul.f32 1.442695, %v1845_v30 }
0x13e5   :  { %v1844_v32 = vpop.xlane.xlu1 %1843 }
0x13e6   :  { %3603 = vpow2.f32 %v1847_v31  ;;  %v1846_v33 = vsub.f32 %v1836_v18, %v1844_v32 }
0x13e8   :  { %v1849_v34 = vmul.f32 1.442695, %v1846_v33 }
0x13ea   :  { %3605 = vpow2.f32 %v1849_v34 }
0x13ec   :  { %v3600_v35 = vpop.eup %3599 }
0x13ed   :  { %v1660_v36 = vsel %vm395_vm2, %v3600_v35, 0.0  ;;  %v3602_v37 = vpop.eup %3601 }
0x13ee   :  { %1661 = vadd.xlane.f32.xlu1 %v1660_v36  ;;  %v1657_v39 = vsel %vm395_vm2, %v3602_v37, 0.0 }
0x13f0   :  { %v3604_v38 = vpop.eup %3603 }
0x13f1   :  { %v1851_v40 = vsel %vm395_vm2, %v3604_v38, 0.0 }
0x13f2   :  { %1658 = vadd.xlane.f32.xlu1 %v1657_v39  ;;  %1852 = vadd.xlane.f32.xlu0 %v1851_v40 }
0x13f4   :  { %v3606_v41 = vpop.eup %3605 }
0x13f5   :  { %v1854_v42 = vsel %vm395_vm2, %v3606_v41, 0.0 }
0x13f6   :  { %1855 = vadd.xlane.f32.xlu1 %v1854_v42  ;;  %v2137_v42 = vmul.f32 %v4101_v54, %v3949_v48 }
0x1407   :  { %3539 = vrot.lane.b32.xlu1 %v3533_v58, %s3646_s23 }
0x147b   :  { %v1662_v43 = vpop.xlane.xlu1 %1661 }
0x147c   :  { %3607 = vrcp.f32 %v1662_v43 }
0x147f   :  { %v1853_v44 = vpop.xlane.xlu0 %1852  ;;  %v1659_v45 = vpop.xlane.xlu1 %1658 }
0x1480   :  { %3609 = vrcp.f32 %v1659_v45 }
0x1481   :  { %3611 = vrcp.f32 %v1853_v44 }
0x1483   :  { %v1856_v46 = vpop.xlane.xlu1 %1855 }
0x1484   :  { %3613 = vrcp.f32 %v1856_v46 }
0x1486   :  { %v3608_v12 = vpop.eup %3607 }
0x1487   :  { %v3540_v50 = vpop.permute.xlu1 %3539  ;;  %v1666_v58 = vmul.f32 %v3608_v12, %v3600_v35 }
0x1488   :  { %v3542_v51 = vunpack.i.h.bf16 %v3540_v50  ;;  %v3541_v52 = vunpack.i.l.bf16 %v3540_v50 }
0x148a   :  { %v3443_v63 = vpack.c.bf16 %v3542_v51, %v3541_v52  ;;  %v3610_v6 = vpop.eup %3609 }
0x148b   :  { %v3612_v59 = vpop.eup %3611  ;;  %v1665_v60 = vmul.f32 %v3610_v6, %v3602_v37 }
0x148c   :  { %3444 = vmatprep.subr.bf16.mxu0 %v3443_v63  ;;  %3464 = vmatprep.subr.bf16.mxu1 %v3443_v63  ;;  %v1859_v27 = vmul.f32 %v3612_v59, %v3604_v38 }
0x148d   :  { %3446 = vmatpush3.bf16.msra.mxu0 %v3443_v63  ;;  %3466 = vmatpush3.bf16.msra.mxu1 %v3443_v63 }
0x148e   :  { %3213 = vmatprep.mubr.msk.f32.mxu0 %vm395_vm2, %v1665_v60  ;;  %3454 = vmatprep.subr.bf16.mxu0 %v3443_v63  ;;  %v3614_v17 = vpop.eup %3613 }
0x148f   :  { %3469 = vmatprep.subr.msk.bf16.mxu1 %vm3857_vm1, %v4111_v61  ;;  %v1860_v4 = vmul.f32 %v3614_v17, %v3606_v41  ;;  %v2136_v41 = vmul.f32 %v4103_v57, %v3949_v48 }
0x1490   :  { %3214 = vmatmul.mubr.msk.f32.vlgmr.msra.gmra.mrb[12].mxu0 %vm395_vm2, %v1666_v58 }
0x1491   :  { %3456 = vmatpush3.bf16.msra.mxu0 %v3443_v63  ;;  %3227 = vmatprep.mubr.msk.f32.mxu0 %vm395_vm2, %v1859_v27 }
0x1492   :  { %3459 = vmatprep.subr.msk.bf16.mxu0 %vm3857_vm1, %v4111_v61 }
0x1494   :  { %3228 = vmatmul.mubr.msk.f32.vlgmr.msra.gmra.mrb[14].mxu0 %vm395_vm2, %v1860_v4  ;;  %v2326_v4 = vld [vmem:[%s4310_s2 + $0x238] sm:$0xff] }
0x1495   :  { %3234 = vmatprep.mubr.msk.f32.mxu0 %vm126_vm0, %v1946_v23  ;;  %v2327_v23 = vld [vmem:[%s4310_s2 + $0x240] sm:$0xff] }
0x149a   :  { %3462 = vmatpush3.bf16.xpose.msk.msra.mxu0 %vm3857_vm1, %v4111_v61 }
0x149b   :  { %3474 = vmatprep.subr.bf16.mxu0 %v3443_v63 }
0x14a1   :  { %3235 = vmatmul.mubr.msk.f32.vlgmr.msra.gmra.mrb[16].mxu0 %vm126_vm0, %v1947_v62  ;;  %v3477_v62 = vpack.c.bf16 %v2327_v23, %v2326_v4  ;;  %v2565_v23 = vld [vmem:[%s4310_s2 + $0x2a0] sm:$0xff] }
0x14a2   :  { %3476 = vmatpush3.bf16.msra.mxu0 %v3443_v63 }
0x14a3   :  { %3478 = vmatprep.subr.bf16.mxu0 %v3477_v62 }
0x1563   :  { %v3215_v0 = vpop.f32.mrb[12].mxu0 }
0x1564   :  { %v1745_v1 = vpop.f32.mrb[13].mxu0  ;;  %v1755_v55 = vmul.f32 %v3215_v0, %v3837_v2 }
0x1565   :  { %v1754_v10 = vmul.f32 %v1745_v1, %v3837_v2 }
0x1567   :  { %v3229_v5 = vpop.f32.mrb[14].mxu0 }
0x1568   :  { %v1943_v56 = vmul.f32 %v3229_v5, %v3908_v49  ;;  %v1933_v9 = vpop.f32.mrb[15].mxu0 }
0x1569   :  { %v1942_v11 = vmul.f32 %v1933_v9, %v3908_v49 }
0x156a   :  { %v1945_v13 = vadd.f32 %v1943_v56, %v1755_v55 }
0x156b   :  { %v1944_v18 = vadd.f32 %v1942_v11, %v1754_v10  ;;  %v2328_v10 = vld [vmem:[%s4310_s2 + $0x248] sm:$0xff]  ;;  %v2329_v11 = vld [vmem:[%s4310_s2 + $0x250] sm:$0xff] }
0x1574   :  { %v3236_v19 = vpop.f32.mrb[16].mxu0 }
0x1575   :  { %v2026_v47 = vadd.f32 %v3236_v19, %v3891_v24  ;;  %v2020_v21 = vpop.f32.mrb[17].mxu0 }
0x1576   :  { %v2021_v25 = vadd.f32 %v2020_v21, %v3884_v20 }
0x1577   :  { %v2032_v53 = vsel %vm395_vm2, %v2026_v47, -inf }
0x1578   :  { %2033 = vmax.xlane.f32.xlu0 %v2032_v53  ;;  %v2029_v26 = vsel %vm395_vm2, %v2021_v25, -inf }
0x1579   :  { %2030 = vmax.xlane.f32.xlu1 %v2029_v26  ;;  %v2904_v26 = vld [vmem:[%s4310_s2 + $0x258] ss:$0 sm:$0xff] }
0x1605   :  { %v2034_v28 = vpop.xlane.xlu0 %2033 }
0x1606   :  { %v2036_v22 = vsub.f32 %v2026_v47, %v2034_v28  ;;  %v2031_v29 = vpop.xlane.xlu1 %2030 }
0x1607   :  { %v2035_v2 = vsub.f32 %v2021_v25, %v2031_v29 }
0x1608   :  { %v2039_v30 = vmul.f32 1.442695, %v2036_v22 }
0x1609   :  { %v2037_v49 = vmul.f32 1.442695, %v2035_v2 }
0x160b   :  { %3615 = vpow2.f32 %v2037_v49 }
0x160c   :  { %3617 = vpow2.f32 %v2039_v30 }
0x1615   :  { %v3616_v31 = vpop.eup %3615 }
0x1616   :  { %v2041_v32 = vsel %vm395_vm2, %v3616_v31, 0.0  ;;  %v3618_v33 = vpop.eup %3617 }
0x1617   :  { %2042 = vadd.xlane.f32.xlu0 %v2041_v32  ;;  %v2044_v34 = vsel %vm395_vm2, %v3618_v33, 0.0 }
0x161b   :  { %2045 = vadd.xlane.f32.xlu0 %v2044_v34 }
0x16a4   :  { %v2043_v35 = vpop.xlane.xlu0 %2042 }
0x16a5   :  { %3619 = vrcp.f32 %v2043_v35 }
0x16a8   :  { %v2046_v36 = vpop.xlane.xlu0 %2045 }
0x16a9   :  { %3621 = vrcp.f32 %v2046_v36 }
0x16af   :  { %v3620_v37 = vpop.eup %3619 }
0x16b0   :  { %v2049_v38 = vmul.f32 %v3620_v37, %v3616_v31 }
0x16b2   :  { %3241 = vmatprep.mubr.msk.f32.mxu1 %vm395_vm2, %v2049_v38 }
0x16b3   :  { %v3622_v39 = vpop.eup %3621 }
0x16b4   :  { %v2050_v40 = vmul.f32 %v3622_v39, %v3618_v33 }
0x16b6   :  { %3242 = vmatmul.mubr.msk.f32.vlgmr.msra.gmra.mrb[22].mxu1 %vm395_vm2, %v2050_v40  ;;  %v2457_v40 = vld [vmem:[%s4310_s2 + $0x268] sm:$0xff] }
0x16b7   :  { %3472 = vmatpush3.bf16.xpose.msk.msra.mxu1 %vm3857_vm1, %v4111_v61  ;;  %3248 = vmatprep.mubr.msk.f32.mxu1 %vm126_vm0, %v2136_v41  ;;  %v2458_v41 = vld [vmem:[%s4310_s2 + $0x270] sm:$0xff] }
0x16be   :  { %3249 = vmatmul.mubr.msk.f32.vlgmr.msra.gmra.mrb[24].mxu1 %vm126_vm0, %v2137_v42  ;;  %v3485_v42 = vpack.c.bf16 %v2458_v41, %v2457_v40 }
0x16c0   :  { %3486 = vmatprep.subr.bf16.mxu1 %v3485_v42 }
0x16c1   :  { %3488 = vmatpush3.bf16.msra.mxu1 %v3485_v42  ;;  %v2659_v42 = vld [vmem:[%s4312_s1 + $0x10] sm:$0xff] }
0x1789   :  { %v3243_v43 = vpop.f32.mrb[22].mxu1 }
0x178a   :  { %v2133_v44 = vmul.f32 %v3243_v43, %v3840_v3  ;;  %v2123_v45 = vpop.f32.mrb[23].mxu1  ;;  %v2459_v43 = vld [vmem:[%s4310_s2 + $0x278] sm:$0xff] }
0x178b   :  { %v2132_v46 = vmul.f32 %v2123_v45, %v3840_v3 }
0x178c   :  { %v2135_v57 = vadd.f32 %v2133_v44, %v1945_v13  ;;  %v3481_v13 = vpack.c.bf16 %v2329_v11, %v2328_v10  ;;  %v2460_v44 = vld [vmem:[%s4310_s2 + $0x280] sm:$0xff]  ;;  %v2907_v11 = vld [vmem:[%s4310_s2 + $0x288] ss:$0 sm:$0xff] }
0x178d   :  { %v2134_v50 = vadd.f32 %v2132_v46, %v1944_v18  ;;  %v3489_v45 = vpack.c.bf16 %v2460_v44, %v2459_v43 }
0x178f   :  { %3490 = vmatprep.subr.bf16.mxu1 %v3489_v45 }
0x1790   :  { %3492 = vmatpush3.bf16.msra.mxu1 %v3489_v45 }
0x1791   :  { %v3250_v51 = vpop.f32.mrb[24].mxu1 }
0x1792   :  { %v2210_v52 = vpop.f32.mrb[25].mxu1  ;;  %v2216_v61 = vadd.f32 %v3250_v51, %v3891_v24 }
0x1793   :  { %v2211_v15 = vadd.f32 %v2210_v52, %v3884_v20 }
0x1794   :  { %v2222_v54 = vsel %vm395_vm2, %v2216_v61, -inf }
0x1795   :  { %v2219_v12 = vsel %vm395_vm2, %v2211_v15, -inf }
0x1796   :  { %2220 = vmax.xlane.f32.xlu0 %v2219_v12 }
0x179a   :  { %2223 = vmax.xlane.f32.xlu0 %v2222_v54 }
0x1823   :  { %v2221_v63 = vpop.xlane.xlu0 %2220 }
0x1824   :  { %v2225_v6 = vsub.f32 %v2211_v15, %v2221_v63 }
0x1826   :  { %v2227_v59 = vmul.f32 1.442695, %v2225_v6 }
0x1827   :  { %v2224_v60 = vpop.xlane.xlu0 %2223 }
0x1828   :  { %3623 = vpow2.f32 %v2227_v59  ;;  %v2226_v3 = vsub.f32 %v2216_v61, %v2224_v60  ;;  %v2418_v61 = vld [vmem:[%s4310_s2 + $0x260] sm:$0x3] }
0x1829   :  { %v2448_v12 = vrot.slane %v2418_v61, %v3785_v14  ;;  %v2454_v60 = vrot.slane %v2418_v61, %v3791_v16  ;;  %v2759_v61 = vld [vmem:[%s4310_s2 + $0x120] sm:$0xff] }
0x182a   :  { %v2229_v58 = vmul.f32 1.442695, %v2226_v3 }
0x182c   :  { %3625 = vpow2.f32 %v2229_v58 }
0x1832   :  { %v3624_v17 = vpop.eup %3623 }
0x1833   :  { %v2231_v27 = vsel %vm395_vm2, %v3624_v17, 0.0 }
0x1834   :  { %2232 = vadd.xlane.f32.xlu0 %v2231_v27 }
0x1836   :  { %v3626_v20 = vpop.eup %3625 }
0x1837   :  { %v2234_v24 = vsel %vm395_vm2, %v3626_v20, 0.0 }
0x1838   :  { %2235 = vadd.xlane.f32.xlu0 %v2234_v24  ;;  %v2564_v24 = vld [vmem:[%s4310_s2 + $0x298] sm:$0xff] }
0x18c1   :  { %v2233_v0 = vpop.xlane.xlu0 %2232 }
0x18c2   :  { %3627 = vrcp.f32 %v2233_v0 }
0x18c5   :  { %v2236_v1 = vpop.xlane.xlu0 %2235 }
0x18c6   :  { %3629 = vrcp.f32 %v2236_v1  ;;  %v2567_v1 = vld [vmem:[%s4310_s2 + $0x2b0] sm:$0xff] }
0x18cc   :  { %v3628_v5 = vpop.eup %3627 }
0x18cd   :  { %v2239_v55 = vmul.f32 %v3628_v5, %v3624_v17  ;;  %v2568_v5 = vld [vmem:[%s4310_s2 + $0x2b8] sm:$0xff] }
0x18cf   :  { %3255 = vmatprep.mubr.msk.f32.mxu0 %vm395_vm2, %v2239_v55  ;;  %v3501_v55 = vpack.c.bf16 %v2568_v5, %v2567_v1 }
0x18d0   :  { %v3630_v56 = vpop.eup %3629 }
0x18d1   :  { %v2240_v9 = vmul.f32 %v3630_v56, %v3626_v20  ;;  %v2563_v20 = vld [vmem:[%s4310_s2 + $0x290] sm:$0xff]  ;;  %v2569_v56 = vld [vmem:[%s4310_s2 + $0x2c0] sm:$0xff] }
0x18d2   :  { %v3493_v4 = vpack.c.bf16 %v2564_v24, %v2563_v20 }
0x18d3   :  { %3256 = vmatmul.mubr.msk.f32.vlgmr.msra.gmra.mrb[18].mxu0 %vm395_vm2, %v2240_v9  ;;  %v2570_v9 = vld [vmem:[%s4310_s2 + $0x2c8] sm:$0xff] }
0x18d4   :  { %3480 = vmatpush3.bf16.msra.mxu0 %v3477_v62  ;;  %v2566_v62 = vld [vmem:[%s4310_s2 + $0x2a8] sm:$0xff]  ;;  %v3505_v10 = vpack.c.bf16 %v2570_v9, %v2569_v56 }
0x18d5   :  { %3482 = vmatprep.subr.bf16.mxu0 %v3481_v13  ;;  %v3497_v0 = vpack.c.bf16 %v2566_v62, %v2565_v23 }
0x18d8   :  { %3484 = vmatpush3.bf16.msra.mxu0 %v3481_v13 }
0x18d9   :  { %3494 = vmatprep.subr.bf16.mxu0 %v3493_v4 }
0x19a6   :  { %v3257_v18 = vpop.f32.mrb[18].mxu0 }
0x19a7   :  { %v2323_v19 = vmul.f32 %v3257_v18, %v3949_v48  ;;  %v2313_v47 = vpop.f32.mrb[19].mxu0 }
0x19a8   :  { %v2322_v21 = vmul.f32 %v2313_v47, %v3949_v48 }
0x19a9   :  { %v2325_v25 = vadd.f32 %v2323_v19, %v2135_v57 }
0x19aa   :  { %v2324_v53 = vadd.f32 %v2322_v21, %v2134_v50 }
0x19ac   :  { %3266 = vmatprep.mubr.msk.f32.mxu0 %vm126_vm0, %v2324_v53 }
0x19ad   :  { %3267 = vmatmul.mubr.msk.f32.vlgmr.msra.gmra.mrb[20].mxu0 %vm126_vm0, %v2325_v25 }
0x19ae   :  { %3496 = vmatpush3.bf16.msra.mxu0 %v3493_v4 }
0x19af   :  { %3498 = vmatprep.subr.bf16.mxu0 %v3497_v0 }
0x19b2   :  { %3500 = vmatpush3.bf16.msra.mxu0 %v3497_v0 }
0x19b3   :  { %3502 = vmatprep.subr.bf16.mxu0 %v3501_v55 }
0x19b6   :  { %3504 = vmatpush3.bf16.msra.mxu0 %v3501_v55 }
0x19b7   :  { %3506 = vmatprep.subr.bf16.mxu0 %v3505_v10 }
0x19ba   :  { %3508 = vmatpush3.bf16.msra.mxu0 %v3505_v10 }
0x1a80   :  { %v3268_v28 = vpop.f32.mrb[20].mxu0 }
0x1a81   :  { %v2413_v22 = vadd.f32 %v3268_v28, %v2904_v26  ;;  %v2407_v29 = vpop.f32.mrb[21].mxu0 }
0x1a82   :  { %v2408_v2 = vadd.f32 %v2904_v26, %v2407_v29 }
0x1a83   :  { %v4217_v30 = vadd.f32 %v2413_v22, %v4066_v7 }
0x1a84   :  { %v4220_v49 = vadd.f32 %v2408_v2, %v4069_v8 }
0x1a85   :  { %v2422_v48 = vsel %vm126_vm0, %v4217_v30, 0.0 }
0x1a86   :  { %2423 = vadd.xlane.f32.xlu1 %v2422_v48  ;;  %v2419_v31 = vsel %vm126_vm0, %v4220_v49, 0.0 }
0x1a87   :  { %2420 = vadd.xlane.f32.xlu0 %v2419_v31 }
0x1b13   :  { %v2424_v32 = vpop.xlane.xlu1 %2423 }
0x1b14   :  { %v2426_v33 = vmul.f32 0.03125, %v2424_v32  ;;  %v2421_v34 = vpop.xlane.xlu0 %2420 }
0x1b15   :  { %v2425_v35 = vmul.f32 0.03125, %v2421_v34  ;;  %v3647_v34 = vmov 0.0|0.0  }
0x1b16   :  { %v2428_v36 = vsub.f32 %v4217_v30, %v2426_v33  ;;  %3509 = vmatprep.subr.bf16.mxu1 %v3647_v34 }
0x1b17   :  { %v2427_v7 = vsub.f32 %v4220_v49, %v2425_v35  ;;  %v3649_v35 = vmov 0.0  }
0x1b18   :  { %v2430_v37 = vmul.f32 %v2428_v36, %v2428_v36 }
0x1b19   :  { %v2429_v38 = vmul.f32 %v2427_v7, %v2427_v7 }
0x1b1a   :  { %v2434_v8 = vsel %vm126_vm0, %v2430_v37, 0.0 }
0x1b1b   :  { %2435 = vadd.xlane.f32.xlu1 %v2434_v8  ;;  %v2431_v39 = vsel %vm126_vm0, %v2429_v38, 0.0 }
0x1b1c   :  { %2432 = vadd.xlane.f32.xlu0 %v2431_v39 }
0x1ba8   :  { %v2436_v46 = vpop.xlane.xlu1 %2435 }
0x1ba9   :  { %v2438_v57 = vmul.f32 0.03125, %v2436_v46  ;;  %v2433_v50 = vpop.xlane.xlu0 %2432 }
0x1baa   :  { %v2437_v51 = vmul.f32 0.03125, %v2433_v50 }
0x1bab   :  { %v2440_v52 = vadd.f32 1e-05, %v2438_v57 }
0x1bac   :  { %v2439_v15 = vadd.f32 1e-05, %v2437_v51  ;;  %v2757_v51 = vld [vmem:[%s4310_s2 + $0x110] sm:$0xff] }
0x1bad   :  { %3631 = vrsqrt.f32 %v2440_v52  ;;  %v2758_v52 = vld [vmem:[%s4310_s2 + $0x118] sm:$0xff] }
0x1bae   :  { %3633 = vrsqrt.f32 %v2439_v15  ;;  %v3513_v15 = vpack.c.bf16 %v2758_v52, %v2757_v51 }
0x1bb7   :  { %v3632_v54 = vpop.eup %3631 }
0x1bb8   :  { %v3634_v63 = vpop.eup %3633  ;;  %v2444_v6 = vmul.f32 %v3632_v54, %v2428_v36  ;;  %v2912_v36 = vld [vmem:[%s4310_s2 + $0x2d0] ss:$0 sm:$0xff] }
0x1bb9   :  { %v2443_v59 = vmul.f32 %v3634_v63, %v2427_v7 }
0x1bba   :  { %v2450_v3 = vmul.f32 %v2448_v12, %v2444_v6 }
0x1bbb   :  { %v2449_v58 = vmul.f32 %v2448_v12, %v2443_v59  ;;  %v2760_v12 = vld [vmem:[%s4310_s2 + $0x128] sm:$0xff] }
0x1bbc   :  { %v2456_v27 = vadd.f32 %v2454_v60, %v2450_v3  ;;  %v3516_v54 = vpack.c.bf16 %v2760_v12, %v2759_v61 }
0x1bbd   :  { %v2455_v17 = vadd.f32 %v2454_v60, %v2449_v58  ;;  %v2733_v60 = vld [vmem:[%s4310_s2 + $0x108] sm:$0x3] }
0x1bbe   :  { %v2750_v3 = vrot.slane %v2733_v60, %v3785_v14 }
0x1bbf   :  { %3277 = vmatprep.mubr.msk.f32.mxu1 %vm126_vm0, %v2455_v17 }
0x1bc0   :  { %3278 = vmatmul.mubr.msk.f32.vlgmr.msra.gmra.mrb[26].mxu1 %vm126_vm0, %v2456_v27  ;;  %v2755_v27 = vrot.slane %v2733_v60, %v3791_v16 }
0x1bc1   :  { %3303 = vmatprep.mubr.msk.f32.mxu1 %vm3648_vm4, %v3649_v35 }
0x1c93   :  { %v3279_v13 = vpop.f32.mrb[26].mxu1 }
0x1c94   :  { %v2544_v18 = vadd.f32 %v3279_v13, %v2907_v11  ;;  %v2538_v19 = vpop.f32.mrb[27].mxu1 }
0x1c95   :  { %v2539_v47 = vadd.f32 %v2907_v11, %v2538_v19 }
0x1c96   :  { %v2911_v21 = vmul.f32 -1.702, %v2544_v18 }
0x1c97   :  { %v2910_v25 = vmul.f32 -1.702, %v2539_v47 }
0x1c98   :  { %v2553_v53 = vmul.f32 1.442695, %v2911_v21 }
0x1c99   :  { %v2551_v26 = vmul.f32 1.442695, %v2910_v25 }
0x1c9a   :  { %3635 = vpow2.f32 %v2553_v53 }
0x1c9b   :  { %3637 = vpow2.f32 %v2551_v26 }
0x1ca4   :  { %v3636_v28 = vpop.eup %3635 }
0x1ca5   :  { %v3638_v22 = vpop.eup %3637  ;;  %v2556_v29 = vadd.f32 1.0, %v3636_v28 }
0x1ca6   :  { %v2555_v2 = vadd.f32 1.0, %v3638_v22 }
0x1ca7   :  { %3639 = vrcp.f32 %v2556_v29 }
0x1ca8   :  { %3641 = vrcp.f32 %v2555_v2 }
0x1cb1   :  { %v3640_v48 = vpop.eup %3639 }
0x1cb2   :  { %v3642_v31 = vpop.eup %3641  ;;  %v2562_v33 = vmul.f32 %v3640_v48, %v2544_v18 }
0x1cb3   :  { %v2561_v32 = vmul.f32 %v3642_v31, %v2539_v47 }
0x1cb5   :  { %3296 = vmatprep.mubr.msk.f32.mxu0 %vm1339_vm3, %v2561_v32 }
0x1cb6   :  { %3297 = vmatmul.mubr.msk.f32.vlgmr.msra.gmra.mrb[22].mxu0 %vm1339_vm3, %v2562_v33 }
0x1d89   :  { %v3298_v7 = vpop.f32.mrb[22].mxu0 }
0x1d8a   :  { %v2654_v37 = vadd.f32 %v3298_v7, %v2912_v36  ;;  %v2648_v38 = vpop.f32.mrb[23].mxu0 }
0x1d8b   :  { %v2649_v8 = vadd.f32 %v2912_v36, %v2648_v38 }
0x1d8c   :  { %v2658_v39 = vadd.f32 %v2654_v37, %v4217_v30 }
0x1d8d   :  { %v2657_v40 = vadd.f32 %v2649_v8, %v4220_v49 }
0x1d8f   :  { %v3510_v41 = vpack.c.bf16 %v2658_v39, %v2657_v40 }
0x1d91   :  { %3511 = vmatpush3.bf16.msra.mxu1 %v3510_v41 }
0x1d92   :  { %3512 = vmatprep.subr.bf16.mxu1 %v3647_v34 }
0x1d94   :  { %3304 = vmatmul.mubr.msk.f32.vlgmr.msra.gmra.mrb[28].mxu1 %vm395_vm2, %v2659_v42 }
0x1d95   :  { %3314 = vmatprep.mubr.msk.f32.mxu1 %vm3648_vm4, %v3649_v35  ;;  %3514 = vmatpush3.bf16.msra.mxu1 %v3513_v15 }
0x1d96   :  { %3515 = vmatprep.subr.bf16.mxu1 %v3647_v34 }
0x1d99   :  { %3517 = vmatpush3.bf16.msra.mxu1 %v3516_v54 }
0x1e67   :  { %v2729_v43 = vpop.f32.mrb[28].mxu1 }
0x1e68   :  { %v3305_v44 = vpop.f32.mrb[29].mxu1  ;;  %v2734_v45 = vsel %vm126_vm0, %v2729_v43, 0.0 }
0x1e69   :  { %2735 = vadd.xlane.f32.xlu0 %v2734_v45 }
0x1ef6   :  { %v2736_v46 = vpop.xlane.xlu0 %2735 }
0x1ef7   :  { %v2737_v57 = vmul.f32 0.03125, %v2736_v46 }
0x1ef9   :  { %v2738_v30 = vsub.f32 %v2729_v43, %v2737_v57 }
0x1efb   :  { %v2739_v50 = vmul.f32 %v2738_v30, %v2738_v30 }
0x1efd   :  { %v2740_v49 = vsel %vm126_vm0, %v2739_v50, 0.0 }
0x1efe   :  { %2741 = vadd.xlane.f32.xlu1 %v2740_v49 }
0x1f8b   :  { %v2742_v63 = vpop.xlane.xlu1 %2741 }
0x1f8c   :  { %v2743_v6 = vmul.f32 0.03125, %v2742_v63 }
0x1f8e   :  { %v2744_v59 = vadd.f32 1e-05, %v2743_v6 }
0x1f90   :  { %3643 = vrsqrt.f32 %v2744_v59 }
0x1f9a   :  { %v3644_v58 = vpop.eup %3643 }
0x1f9b   :  { %v2746_v17 = vmul.f32 %v3644_v58, %v2738_v30 }
0x1f9d   :  { %v2751_v20 = vmul.f32 %v2750_v3, %v2746_v17 }
0x1f9f   :  { %v2756_v24 = vadd.f32 %v2755_v27, %v2751_v20 }
0x1fa1   :  { %3315 = vmatmul.mubr.msk.f32.vlgmr.msra.gmra.mrb[30].mxu1 %vm126_vm0, %v2756_v24 }
0x2074   :  { %v2830_v4 = vpop.f32.mrb[30].mxu1 }
0x2075   :  { %2834 = vst [vmem:[%s4313_s3] sm:$0xff] %v2830_v4  ;;  %v3316_v23 = vpop.f32.mrb[31].mxu1 }

</bundles_post_ra>
